<compile_context>
chip_gen: v6e
topology: v6e:2x2x1
jax: 0.10.0
libtpu: 0.0.40
codegen_flags: <defaults>
</compile_context>

<pallas_src>
import functools
import math

import jax
import jax.numpy as jnp
from jax.experimental import pallas as pl
from jax.experimental.pallas import tpu as pltpu

D_MODEL = 32
N_HEAD = 4
D_HEAD = D_MODEL // N_HEAD
D_FF = 64
NUM_LAYERS = 2
LN_EPS = 1e-5

# Row layout of the packed small-parameter array (shape (8, 128), f32).
ROW_B_QKV, ROW_B_O, ROW_G1, ROW_B1, ROW_C1, ROW_C2, ROW_G2, ROW_B2 = range(8)
SMALL_ROWS, SMALL_LANES = 8, 128


def _mm(a, b):
    """2-D matmul, f32 in / f32 accumulation (MXU)."""
    return jnp.dot(a, b, preferred_element_type=jnp.float32)


def _layernorm(x, gamma, beta):
    mu = jnp.mean(x, axis=-1, keepdims=True)
    var = jnp.mean(jnp.square(x - mu), axis=-1, keepdims=True)
    return (x - mu) * jax.lax.rsqrt(var + LN_EPS) * gamma + beta


def fused_encoder_kernel(x_ref, wqkv_ref, wo_ref, w1_ref, w2_ref, sp_ref,
                         out_ref, *, num_layers):
    bb, seq, d = x_ref.shape            # batch-block, sequence, model dim (static)
    rows = bb * seq
    n_groups = 3 * N_HEAD               # q/k/v heads packed along the lane dim

    x = x_ref[...].reshape(rows, d)     # activations live in VMEM/vregs for all layers
    wqkv = wqkv_ref[...]                # (D, 3D)  packed Q|K|V projection
    wo = wo_ref[...]                    # (D, D)
    w1 = w1_ref[...]                    # (D, D_FF)
    w2 = w2_ref[...]                    # (D_FF, D)
    sp = sp_ref[...]                    # (8, 128) packed small params

    # Hoist all (1, n) -> (rows, n) broadcasts out of the layer loop (no CSE of
    # broadcast_in_dim across iterations).
    b_qkv = jnp.broadcast_to(sp[ROW_B_QKV:ROW_B_QKV + 1, :3 * d], (rows, 3 * d))
    b_o = jnp.broadcast_to(sp[ROW_B_O:ROW_B_O + 1, :d], (rows, d))
    g1 = jnp.broadcast_to(sp[ROW_G1:ROW_G1 + 1, :d], (rows, d))
    b1 = jnp.broadcast_to(sp[ROW_B1:ROW_B1 + 1, :d], (rows, d))
    c1 = jnp.broadcast_to(sp[ROW_C1:ROW_C1 + 1, :D_FF], (rows, D_FF))
    c2 = jnp.broadcast_to(sp[ROW_C2:ROW_C2 + 1, :d], (rows, d))
    g2 = jnp.broadcast_to(sp[ROW_G2:ROW_G2 + 1, :d], (rows, d))
    b2 = jnp.broadcast_to(sp[ROW_B2:ROW_B2 + 1, :d], (rows, d))

    scale = 1.0 / math.sqrt(D_HEAD)

    # Shared weights applied num_layers times (the ModuleList holds the same layer).
    for _ in range(num_layers):
        # --- multi-head self-attention: fused QKV projection, all heads batched -----
        qkv = _mm(x, wqkv) + b_qkv                               # (rows, 3D)
        qkv4 = qkv.reshape(bb, seq, n_groups, D_HEAD)            # (B, S, 3H, Dh)
        qkv4 = pltpu.einshape("bsgd->bgsd", qkv4)                # (B, 3H, S, Dh)
        q = qkv4[:, 0:N_HEAD].reshape(bb * N_HEAD, seq, D_HEAD)          # (B*H, S, Dh)
        k = qkv4[:, N_HEAD:2 * N_HEAD].reshape(bb * N_HEAD, seq, D_HEAD)
        v = qkv4[:, 2 * N_HEAD:3 * N_HEAD].reshape(bb * N_HEAD, seq, D_HEAD)

        # One score einsum + ONE softmax chain + one PV einsum for all heads.
        s = jnp.einsum('bqd,bkd->bqk', q, k,
                       preferred_element_type=jnp.float32) * scale       # (B*H, S, S)
        s = s - jnp.max(s, axis=-1, keepdims=True)
        p = jnp.exp(s)
        p = p / jnp.sum(p, axis=-1, keepdims=True)   # exact divide (torch f32 parity)
        o = jnp.einsum('bqk,bkd->bqd', p, v,
                       preferred_element_type=jnp.float32)               # (B*H, S, Dh)

        o = pltpu.einshape("bhsd->bshd", o.reshape(bb, N_HEAD, seq, D_HEAD))
        attn = o.reshape(rows, d)                                        # heads concat
        attn = _mm(attn, wo) + b_o                                       # out proj

        # add & norm 1
        x1 = _layernorm(x + attn, g1, b1)

        # --- feed-forward (ReLU) -----------------------------------------------------
        h1 = jnp.maximum(_mm(x1, w1) + c1, 0.0)
        ff = _mm(h1, w2) + c2

        # add & norm 2
        x = _layernorm(x1 + ff, g2, b2)

    out_ref[...] = x.reshape(bb, seq, d)
    # TODO(synk): dropout inside the encoder layer is omitted (eval mode / p=0).


def _pick_block_b(batch, seq, target_rows=512):
    """Largest batch block (divisor of `batch`) with <= target_rows rows per grid step.

    Tiny problems (batch*seq <= target_rows) run as a single grid step (no splitting of
    tiny work); large batches get multiple blocks to amortize fixed overhead and, on
    v7x, to shard across the two TensorCores via the 'parallel' grid axis.
    """
    if batch * seq <= target_rows:
        return batch
    best = 1
    for cand in range(1, batch + 1):
        if batch % cand == 0 and cand * seq <= target_rows:
            best = cand
    return best


def transformer_encoder(src, params, num_layers=NUM_LAYERS):
    """Full num_layers (shared-weight) encoder stack as a single Pallas kernel."""
    B, S, D = src.shape
    wqkv, wo, w1, w2, small = params
    block_b = _pick_block_b(B, S)
    grid = (B // block_b,)

    kernel = functools.partial(fused_encoder_kernel, num_layers=num_layers)
    const = lambda b: (0, 0)             # weights stay VMEM-resident across the grid
    out = pl.pallas_call(
        kernel,
        out_shape=jax.ShapeDtypeStruct((B, S, D), jnp.float32),
        grid=grid,
        in_specs=[
            pl.BlockSpec((block_b, S, D), lambda b: (b, 0, 0)),
            pl.BlockSpec((D, 3 * D), const),
            pl.BlockSpec((D, D), const),
            pl.BlockSpec((D, D_FF), const),
            pl.BlockSpec((D_FF, D), const),
            pl.BlockSpec((SMALL_ROWS, SMALL_LANES), const),
        ],
        out_specs=pl.BlockSpec((block_b, S, D), lambda b: (b, 0, 0)),
        compiler_params=pltpu.CompilerParams(
            dimension_semantics=("parallel",),   # shards batch blocks on v7x's 2 TCs
        ),
    )(src, wqkv, wo, w1, w2, small)
    return out


def init_params(key):
    ks = jax.random.split(key, 10)
    scale = 0.1

    def w(k, shape):
        return (scale * jax.random.normal(k, shape)).astype(jnp.float32)

    wq = w(ks[0], (D_MODEL, D_MODEL))
    wk = w(ks[1], (D_MODEL, D_MODEL))
    wv = w(ks[2], (D_MODEL, D_MODEL))
    wqkv = jnp.concatenate([wq, wk, wv], axis=1)          # (D, 3D) packed QKV weight
    wo = w(ks[3], (D_MODEL, D_MODEL))
    w1 = w(ks[4], (D_MODEL, D_FF))
    w2 = w(ks[5], (D_FF, D_MODEL))

    b_qkv = w(ks[6], (3 * D_MODEL,))
    b_o = w(ks[7], (D_MODEL,))
    c1 = w(ks[8], (D_FF,))
    c2 = w(ks[9], (D_MODEL,))

    small = jnp.zeros((SMALL_ROWS, SMALL_LANES), jnp.float32)
    small = small.at[ROW_B_QKV, :3 * D_MODEL].set(b_qkv)
    small = small.at[ROW_B_O, :D_MODEL].set(b_o)
    small = small.at[ROW_G1, :D_MODEL].set(1.0)           # LN1 gamma
    small = small.at[ROW_C1, :D_FF].set(c1)
    small = small.at[ROW_C2, :D_MODEL].set(c2)
    small = small.at[ROW_G2, :D_MODEL].set(1.0)           # LN2 gamma
    # ROW_B1 / ROW_B2 (LayerNorm betas) stay zero.
    return (wqkv, wo, w1, w2, small)


def transformer_encoder_ref(src, params, num_layers=NUM_LAYERS):
    """Pure-JAX reference (same math, high-precision dots) for a correctness check."""
    B, S, D = src.shape
    wqkv, wo, w1, w2, sp = params
    hp = jax.lax.Precision.HIGHEST
    b_qkv = sp[ROW_B_QKV, :3 * D]
    b_o = sp[ROW_B_O, :D]
    g1, b1 = sp[ROW_G1, :D], sp[ROW_B1, :D]
    c1, c2 = sp[ROW_C1, :D_FF], sp[ROW_C2, :D]
    g2, b2 = sp[ROW_G2, :D], sp[ROW_B2, :D]

    def ln(y, g, b):
        mu = jnp.mean(y, -1, keepdims=True)
        var = jnp.mean(jnp.square(y - mu), -1, keepdims=True)
        return (y - mu) / jnp.sqrt(var + LN_EPS) * g + b

    x = src.reshape(B * S, D)
    for _ in range(num_layers):
        qkv = jnp.dot(x, wqkv, precision=hp) + b_qkv
        q = qkv[:, :D].reshape(B, S, N_HEAD, D_HEAD)
        k = qkv[:, D:2 * D].reshape(B, S, N_HEAD, D_HEAD)
        v = qkv[:, 2 * D:].reshape(B, S, N_HEAD, D_HEAD)
        s = jnp.einsum('bqhd,bkhd->bhqk', q, k, precision=hp) / math.sqrt(D_HEAD)
        p = jax.nn.softmax(s, axis=-1)
        o = jnp.einsum('bhqk,bkhd->bqhd', p, v, precision=hp).reshape(B * S, D)
        attn = jnp.dot(o, wo, precision=hp) + b_o
        x1 = ln(x + attn, g1, b1)
        h1 = jnp.maximum(jnp.dot(x1, w1, precision=hp) + c1, 0.0)
        x = ln(x1 + jnp.dot(h1, w2, precision=hp) + c2, g2, b2)
    return x.reshape(B, S, D)


if __name__ == "__main__":
    key = jax.random.PRNGKey(0)
    k_x, k_p = jax.random.split(key)

    B, S = 2, 8
    src = jax.random.normal(k_x, (B, S, D_MODEL), dtype=jnp.float32)
    params = init_params(k_p)

    out = transformer_encoder(src, params, NUM_LAYERS)
    out = jax.block_until_ready(out)

    assert out.shape == (B, S, D_MODEL) and out.dtype == jnp.float32
    assert bool(jnp.all(jnp.isfinite(out)))

    ref = transformer_encoder_ref(src, params, NUM_LAYERS)
    assert bool(jnp.allclose(out, ref, atol=1e-2, rtol=1e-2)), (
        "kernel output does not match pure-JAX reference")

    print("KERNEL_OK")
</pallas_src>

<mosaic_0001>
module attributes {stable_mosaic.version = 11 : i64} {
  func.func @fused_encoder_kernel(%arg0: i32, %arg1: memref<2x8x32xf32, #tpu.memory_space<vmem>>, %arg2: memref<32x96xf32, #tpu.memory_space<vmem>>, %arg3: memref<32x32xf32, #tpu.memory_space<vmem>>, %arg4: memref<32x64xf32, #tpu.memory_space<vmem>>, %arg5: memref<64x32xf32, #tpu.memory_space<vmem>>, %arg6: memref<8x128xf32, #tpu.memory_space<vmem>>, %arg7: memref<2x8x32xf32, #tpu.memory_space<vmem>>) attributes {dimension_semantics = [#tpu.dimension_semantics<parallel>], iteration_bounds = array<i64: 1>, scalar_prefetch = 0 : i64, scratch_operands = 0 : i64, tpu.core_type = #tpu.core_type<tc>, window_params = [{transform_indices = @transform_0, window_bounds = array<i64: 2, 8, 32>}, {pipeline_mode = #tpu.pipeline_mode<synchronous>, transform_indices = @transform_1, window_bounds = array<i64: 32, 96>}, {pipeline_mode = #tpu.pipeline_mode<synchronous>, transform_indices = @transform_2, window_bounds = array<i64: 32, 32>}, {pipeline_mode = #tpu.pipeline_mode<synchronous>, transform_indices = @transform_3, window_bounds = array<i64: 32, 64>}, {pipeline_mode = #tpu.pipeline_mode<synchronous>, transform_indices = @transform_4, window_bounds = array<i64: 64, 32>}, {pipeline_mode = #tpu.pipeline_mode<synchronous>, transform_indices = @transform_5, window_bounds = array<i64: 8, 128>}, {transform_indices = @transform_6, window_bounds = array<i64: 2, 8, 32>}]} {
    %c0 = arith.constant 0 : index
    %c0_0 = arith.constant 0 : index
    %c0_1 = arith.constant 0 : index
    %0 = vector.load %arg1[%c0, %c0_0, %c0_1] : memref<2x8x32xf32, #tpu.memory_space<vmem>>, vector<2x8x32xf32>
    %1 = vector.shape_cast %0 : vector<2x8x32xf32> to vector<16x32xf32>
    %c0_2 = arith.constant 0 : index
    %c0_3 = arith.constant 0 : index
    %2 = vector.load %arg2[%c0_2, %c0_3] : memref<32x96xf32, #tpu.memory_space<vmem>>, vector<32x96xf32>
    %c0_4 = arith.constant 0 : index
    %c0_5 = arith.constant 0 : index
    %3 = vector.load %arg3[%c0_4, %c0_5] : memref<32x32xf32, #tpu.memory_space<vmem>>, vector<32x32xf32>
    %c0_6 = arith.constant 0 : index
    %c0_7 = arith.constant 0 : index
    %4 = vector.load %arg4[%c0_6, %c0_7] : memref<32x64xf32, #tpu.memory_space<vmem>>, vector<32x64xf32>
    %c0_8 = arith.constant 0 : index
    %c0_9 = arith.constant 0 : index
    %5 = vector.load %arg5[%c0_8, %c0_9] : memref<64x32xf32, #tpu.memory_space<vmem>>, vector<64x32xf32>
    %c0_10 = arith.constant 0 : index
    %c0_11 = arith.constant 0 : index
    %6 = vector.load %arg6[%c0_10, %c0_11] : memref<8x128xf32, #tpu.memory_space<vmem>>, vector<8x128xf32>
    %7 = vector.extract_strided_slice %6 {offsets = [0, 0], sizes = [1, 96], strides = [1, 1]} : vector<8x128xf32> to vector<1x96xf32>
    %8 = vector.shape_cast %7 : vector<1x96xf32> to vector<1x96xf32>
    %9 = vector.broadcast %8 : vector<1x96xf32> to vector<16x96xf32>
    %10 = vector.extract_strided_slice %6 {offsets = [1, 0], sizes = [1, 32], strides = [1, 1]} : vector<8x128xf32> to vector<1x32xf32>
    %11 = vector.shape_cast %10 : vector<1x32xf32> to vector<1x32xf32>
    %12 = vector.broadcast %11 : vector<1x32xf32> to vector<16x32xf32>
    %13 = vector.extract_strided_slice %6 {offsets = [2, 0], sizes = [1, 32], strides = [1, 1]} : vector<8x128xf32> to vector<1x32xf32>
    %14 = vector.shape_cast %13 : vector<1x32xf32> to vector<1x32xf32>
    %15 = vector.broadcast %14 : vector<1x32xf32> to vector<16x32xf32>
    %16 = vector.extract_strided_slice %6 {offsets = [3, 0], sizes = [1, 32], strides = [1, 1]} : vector<8x128xf32> to vector<1x32xf32>
    %17 = vector.shape_cast %16 : vector<1x32xf32> to vector<1x32xf32>
    %18 = vector.broadcast %17 : vector<1x32xf32> to vector<16x32xf32>
    %19 = vector.extract_strided_slice %6 {offsets = [4, 0], sizes = [1, 64], strides = [1, 1]} : vector<8x128xf32> to vector<1x64xf32>
    %20 = vector.shape_cast %19 : vector<1x64xf32> to vector<1x64xf32>
    %21 = vector.broadcast %20 : vector<1x64xf32> to vector<16x64xf32>
    %22 = vector.extract_strided_slice %6 {offsets = [5, 0], sizes = [1, 32], strides = [1, 1]} : vector<8x128xf32> to vector<1x32xf32>
    %23 = vector.shape_cast %22 : vector<1x32xf32> to vector<1x32xf32>
    %24 = vector.broadcast %23 : vector<1x32xf32> to vector<16x32xf32>
    %25 = vector.extract_strided_slice %6 {offsets = [6, 0], sizes = [1, 32], strides = [1, 1]} : vector<8x128xf32> to vector<1x32xf32>
    %26 = vector.shape_cast %25 : vector<1x32xf32> to vector<1x32xf32>
    %27 = vector.broadcast %26 : vector<1x32xf32> to vector<16x32xf32>
    %28 = vector.extract_strided_slice %6 {offsets = [7, 0], sizes = [1, 32], strides = [1, 1]} : vector<8x128xf32> to vector<1x32xf32>
    %29 = vector.shape_cast %28 : vector<1x32xf32> to vector<1x32xf32>
    %30 = vector.broadcast %29 : vector<1x32xf32> to vector<16x32xf32>
    %cst = arith.constant dense<0.000000e+00> : vector<16x96xf32>
    %31 = tpu.matmul %1, %2, %cst {dimension_numbers = #tpu.dot_dimension_numbers<[1], [0], [0], [1], [0, 0, 1, 1], [], []>} : vector<16x32xf32>, vector<32x96xf32>, vector<16x96xf32> -> vector<16x96xf32>
    %32 = arith.addf %31, %9 : vector<16x96xf32>
    %33 = vector.shape_cast %32 : vector<16x96xf32> to vector<2x8x12x8xf32>
    %34 = tpu.transpose %33, [0, 2, 1, 3] : vector<2x8x12x8xf32> -> vector<2x12x8x8xf32>
    %35 = vector.extract_strided_slice %34 {offsets = [0, 0, 0, 0], sizes = [2, 4, 8, 8], strides = [1, 1, 1, 1]} : vector<2x12x8x8xf32> to vector<2x4x8x8xf32>
    %36 = vector.shape_cast %35 : vector<2x4x8x8xf32> to vector<8x8x8xf32>
    %37 = vector.extract_strided_slice %34 {offsets = [0, 4, 0, 0], sizes = [2, 4, 8, 8], strides = [1, 1, 1, 1]} : vector<2x12x8x8xf32> to vector<2x4x8x8xf32>
    %38 = vector.shape_cast %37 : vector<2x4x8x8xf32> to vector<8x8x8xf32>
    %39 = vector.extract_strided_slice %34 {offsets = [0, 8, 0, 0], sizes = [2, 4, 8, 8], strides = [1, 1, 1, 1]} : vector<2x12x8x8xf32> to vector<2x4x8x8xf32>
    %40 = vector.shape_cast %39 : vector<2x4x8x8xf32> to vector<8x8x8xf32>
    "tpu.trace_start"() <{level = 10 : i32, message = "bqd,bkd->bqk"}> : () -> ()
    %cst_12 = arith.constant dense<0.000000e+00> : vector<8x8x8xf32>
    %41 = tpu.matmul %36, %38, %cst_12 {dimension_numbers = #tpu.dot_dimension_numbers<[2], [2], [1], [1], [0, 0, 0, 1, 1, 1], [0], [0]>} : vector<8x8x8xf32>, vector<8x8x8xf32>, vector<8x8x8xf32> -> vector<8x8x8xf32>
    "tpu.trace_stop"() : () -> ()
    %cst_13 = arith.constant 0.353553385 : f32
    %42 = vector.broadcast %cst_13 : f32 to vector<8x8x8xf32>
    %43 = arith.mulf %41, %42 : vector<8x8x8xf32>
    %cst_14 = arith.constant dense<0xFF800000> : vector<8x8xf32>
    %44 = vector.multi_reduction <maximumf>, %43, %cst_14 [2] : vector<8x8x8xf32> to vector<8x8xf32>
    %45 = vector.shape_cast %44 : vector<8x8xf32> to vector<8x8x1xf32>
    %46 = vector.broadcast %45 : vector<8x8x1xf32> to vector<8x8x8xf32>
    %47 = arith.subf %43, %46 : vector<8x8x8xf32>
    %48 = math.exp %47 : vector<8x8x8xf32>
    %cst_15 = arith.constant dense<0.000000e+00> : vector<8x8xf32>
    %49 = vector.multi_reduction <add>, %48, %cst_15 [2] : vector<8x8x8xf32> to vector<8x8xf32>
    %50 = vector.shape_cast %49 : vector<8x8xf32> to vector<8x8x1xf32>
    %51 = vector.broadcast %50 : vector<8x8x1xf32> to vector<8x8x8xf32>
    %52 = arith.divf %48, %51 : vector<8x8x8xf32>
    "tpu.trace_start"() <{level = 10 : i32, message = "bqk,bkd->bqd"}> : () -> ()
    %cst_16 = arith.constant dense<0.000000e+00> : vector<8x8x8xf32>
    %53 = tpu.matmul %52, %40, %cst_16 {dimension_numbers = #tpu.dot_dimension_numbers<[2], [1], [1], [2], [0, 0, 0, 1, 1, 2], [0], [0]>} : vector<8x8x8xf32>, vector<8x8x8xf32>, vector<8x8x8xf32> -> vector<8x8x8xf32>
    "tpu.trace_stop"() : () -> ()
    %54 = vector.shape_cast %53 : vector<8x8x8xf32> to vector<2x4x8x8xf32>
    %55 = tpu.transpose %54, [0, 2, 1, 3] : vector<2x4x8x8xf32> -> vector<2x8x4x8xf32>
    %56 = vector.shape_cast %55 : vector<2x8x4x8xf32> to vector<16x32xf32>
    %cst_17 = arith.constant dense<0.000000e+00> : vector<16x32xf32>
    %57 = tpu.matmul %56, %3, %cst_17 {dimension_numbers = #tpu.dot_dimension_numbers<[1], [0], [0], [1], [0, 0, 1, 1], [], []>} : vector<16x32xf32>, vector<32x32xf32>, vector<16x32xf32> -> vector<16x32xf32>
    %58 = arith.addf %57, %12 : vector<16x32xf32>
    %59 = arith.addf %1, %58 : vector<16x32xf32>
    %cst_18 = arith.constant dense<0.000000e+00> : vector<16xf32>
    %60 = vector.multi_reduction <add>, %59, %cst_18 [1] : vector<16x32xf32> to vector<16xf32>
    %61 = vector.shape_cast %60 : vector<16xf32> to vector<16x1xf32>
    %cst_19 = arith.constant 3.200000e+01 : f32
    %62 = vector.broadcast %cst_19 : f32 to vector<16x1xf32>
    %63 = arith.divf %61, %62 : vector<16x1xf32>
    %64 = vector.broadcast %63 : vector<16x1xf32> to vector<16x32xf32>
    %65 = arith.subf %59, %64 : vector<16x32xf32>
    %66 = arith.mulf %65, %65 : vector<16x32xf32>
    %cst_20 = arith.constant dense<0.000000e+00> : vector<16xf32>
    %67 = vector.multi_reduction <add>, %66, %cst_20 [1] : vector<16x32xf32> to vector<16xf32>
    %68 = vector.shape_cast %67 : vector<16xf32> to vector<16x1xf32>
    %cst_21 = arith.constant 3.200000e+01 : f32
    %69 = vector.broadcast %cst_21 : f32 to vector<16x1xf32>
    %70 = arith.divf %68, %69 : vector<16x1xf32>
    %71 = vector.broadcast %63 : vector<16x1xf32> to vector<16x32xf32>
    %72 = arith.subf %59, %71 : vector<16x32xf32>
    %cst_22 = arith.constant 9.99999974E-6 : f32
    %73 = vector.broadcast %cst_22 : f32 to vector<16x1xf32>
    %74 = arith.addf %70, %73 : vector<16x1xf32>
    %75 = math.rsqrt %74 : vector<16x1xf32>
    %76 = vector.broadcast %75 : vector<16x1xf32> to vector<16x32xf32>
    %77 = arith.mulf %72, %76 : vector<16x32xf32>
    %78 = arith.mulf %77, %15 : vector<16x32xf32>
    %79 = arith.addf %78, %18 : vector<16x32xf32>
    %cst_23 = arith.constant dense<0.000000e+00> : vector<16x64xf32>
    %80 = tpu.matmul %79, %4, %cst_23 {dimension_numbers = #tpu.dot_dimension_numbers<[1], [0], [0], [1], [0, 0, 1, 1], [], []>} : vector<16x32xf32>, vector<32x64xf32>, vector<16x64xf32> -> vector<16x64xf32>
    %81 = arith.addf %80, %21 : vector<16x64xf32>
    %cst_24 = arith.constant 0.000000e+00 : f32
    %82 = vector.broadcast %cst_24 : f32 to vector<16x64xf32>
    %83 = arith.maximumf %81, %82 : vector<16x64xf32>
    %cst_25 = arith.constant dense<0.000000e+00> : vector<16x32xf32>
    %84 = tpu.matmul %83, %5, %cst_25 {dimension_numbers = #tpu.dot_dimension_numbers<[1], [0], [0], [1], [0, 0, 1, 1], [], []>} : vector<16x64xf32>, vector<64x32xf32>, vector<16x32xf32> -> vector<16x32xf32>
    %85 = arith.addf %84, %24 : vector<16x32xf32>
    %86 = arith.addf %79, %85 : vector<16x32xf32>
    %cst_26 = arith.constant dense<0.000000e+00> : vector<16xf32>
    %87 = vector.multi_reduction <add>, %86, %cst_26 [1] : vector<16x32xf32> to vector<16xf32>
    %88 = vector.shape_cast %87 : vector<16xf32> to vector<16x1xf32>
    %cst_27 = arith.constant 3.200000e+01 : f32
    %89 = vector.broadcast %cst_27 : f32 to vector<16x1xf32>
    %90 = arith.divf %88, %89 : vector<16x1xf32>
    %91 = vector.broadcast %90 : vector<16x1xf32> to vector<16x32xf32>
    %92 = arith.subf %86, %91 : vector<16x32xf32>
    %93 = arith.mulf %92, %92 : vector<16x32xf32>
    %cst_28 = arith.constant dense<0.000000e+00> : vector<16xf32>
    %94 = vector.multi_reduction <add>, %93, %cst_28 [1] : vector<16x32xf32> to vector<16xf32>
    %95 = vector.shape_cast %94 : vector<16xf32> to vector<16x1xf32>
    %cst_29 = arith.constant 3.200000e+01 : f32
    %96 = vector.broadcast %cst_29 : f32 to vector<16x1xf32>
    %97 = arith.divf %95, %96 : vector<16x1xf32>
    %98 = vector.broadcast %90 : vector<16x1xf32> to vector<16x32xf32>
    %99 = arith.subf %86, %98 : vector<16x32xf32>
    %cst_30 = arith.constant 9.99999974E-6 : f32
    %100 = vector.broadcast %cst_30 : f32 to vector<16x1xf32>
    %101 = arith.addf %97, %100 : vector<16x1xf32>
    %102 = math.rsqrt %101 : vector<16x1xf32>
    %103 = vector.broadcast %102 : vector<16x1xf32> to vector<16x32xf32>
    %104 = arith.mulf %99, %103 : vector<16x32xf32>
    %105 = arith.mulf %104, %27 : vector<16x32xf32>
    %106 = arith.addf %105, %30 : vector<16x32xf32>
    %cst_31 = arith.constant dense<0.000000e+00> : vector<16x96xf32>
    %107 = tpu.matmul %106, %2, %cst_31 {dimension_numbers = #tpu.dot_dimension_numbers<[1], [0], [0], [1], [0, 0, 1, 1], [], []>} : vector<16x32xf32>, vector<32x96xf32>, vector<16x96xf32> -> vector<16x96xf32>
    %108 = arith.addf %107, %9 : vector<16x96xf32>
    %109 = vector.shape_cast %108 : vector<16x96xf32> to vector<2x8x12x8xf32>
    %110 = tpu.transpose %109, [0, 2, 1, 3] : vector<2x8x12x8xf32> -> vector<2x12x8x8xf32>
    %111 = vector.extract_strided_slice %110 {offsets = [0, 0, 0, 0], sizes = [2, 4, 8, 8], strides = [1, 1, 1, 1]} : vector<2x12x8x8xf32> to vector<2x4x8x8xf32>
    %112 = vector.shape_cast %111 : vector<2x4x8x8xf32> to vector<8x8x8xf32>
    %113 = vector.extract_strided_slice %110 {offsets = [0, 4, 0, 0], sizes = [2, 4, 8, 8], strides = [1, 1, 1, 1]} : vector<2x12x8x8xf32> to vector<2x4x8x8xf32>
    %114 = vector.shape_cast %113 : vector<2x4x8x8xf32> to vector<8x8x8xf32>
    %115 = vector.extract_strided_slice %110 {offsets = [0, 8, 0, 0], sizes = [2, 4, 8, 8], strides = [1, 1, 1, 1]} : vector<2x12x8x8xf32> to vector<2x4x8x8xf32>
    %116 = vector.shape_cast %115 : vector<2x4x8x8xf32> to vector<8x8x8xf32>
    "tpu.trace_start"() <{level = 10 : i32, message = "bqd,bkd->bqk"}> : () -> ()
    %cst_32 = arith.constant dense<0.000000e+00> : vector<8x8x8xf32>
    %117 = tpu.matmul %112, %114, %cst_32 {dimension_numbers = #tpu.dot_dimension_numbers<[2], [2], [1], [1], [0, 0, 0, 1, 1, 1], [0], [0]>} : vector<8x8x8xf32>, vector<8x8x8xf32>, vector<8x8x8xf32> -> vector<8x8x8xf32>
    "tpu.trace_stop"() : () -> ()
    %cst_33 = arith.constant 0.353553385 : f32
    %118 = vector.broadcast %cst_33 : f32 to vector<8x8x8xf32>
    %119 = arith.mulf %117, %118 : vector<8x8x8xf32>
    %cst_34 = arith.constant dense<0xFF800000> : vector<8x8xf32>
    %120 = vector.multi_reduction <maximumf>, %119, %cst_34 [2] : vector<8x8x8xf32> to vector<8x8xf32>
    %121 = vector.shape_cast %120 : vector<8x8xf32> to vector<8x8x1xf32>
    %122 = vector.broadcast %121 : vector<8x8x1xf32> to vector<8x8x8xf32>
    %123 = arith.subf %119, %122 : vector<8x8x8xf32>
    %124 = math.exp %123 : vector<8x8x8xf32>
    %cst_35 = arith.constant dense<0.000000e+00> : vector<8x8xf32>
    %125 = vector.multi_reduction <add>, %124, %cst_35 [2] : vector<8x8x8xf32> to vector<8x8xf32>
    %126 = vector.shape_cast %125 : vector<8x8xf32> to vector<8x8x1xf32>
    %127 = vector.broadcast %126 : vector<8x8x1xf32> to vector<8x8x8xf32>
    %128 = arith.divf %124, %127 : vector<8x8x8xf32>
    "tpu.trace_start"() <{level = 10 : i32, message = "bqk,bkd->bqd"}> : () -> ()
    %cst_36 = arith.constant dense<0.000000e+00> : vector<8x8x8xf32>
    %129 = tpu.matmul %128, %116, %cst_36 {dimension_numbers = #tpu.dot_dimension_numbers<[2], [1], [1], [2], [0, 0, 0, 1, 1, 2], [0], [0]>} : vector<8x8x8xf32>, vector<8x8x8xf32>, vector<8x8x8xf32> -> vector<8x8x8xf32>
    "tpu.trace_stop"() : () -> ()
    %130 = vector.shape_cast %129 : vector<8x8x8xf32> to vector<2x4x8x8xf32>
    %131 = tpu.transpose %130, [0, 2, 1, 3] : vector<2x4x8x8xf32> -> vector<2x8x4x8xf32>
    %132 = vector.shape_cast %131 : vector<2x8x4x8xf32> to vector<16x32xf32>
    %cst_37 = arith.constant dense<0.000000e+00> : vector<16x32xf32>
    %133 = tpu.matmul %132, %3, %cst_37 {dimension_numbers = #tpu.dot_dimension_numbers<[1], [0], [0], [1], [0, 0, 1, 1], [], []>} : vector<16x32xf32>, vector<32x32xf32>, vector<16x32xf32> -> vector<16x32xf32>
    %134 = arith.addf %133, %12 : vector<16x32xf32>
    %135 = arith.addf %106, %134 : vector<16x32xf32>
    %cst_38 = arith.constant dense<0.000000e+00> : vector<16xf32>
    %136 = vector.multi_reduction <add>, %135, %cst_38 [1] : vector<16x32xf32> to vector<16xf32>
    %137 = vector.shape_cast %136 : vector<16xf32> to vector<16x1xf32>
    %cst_39 = arith.constant 3.200000e+01 : f32
    %138 = vector.broadcast %cst_39 : f32 to vector<16x1xf32>
    %139 = arith.divf %137, %138 : vector<16x1xf32>
    %140 = vector.broadcast %139 : vector<16x1xf32> to vector<16x32xf32>
    %141 = arith.subf %135, %140 : vector<16x32xf32>
    %142 = arith.mulf %141, %141 : vector<16x32xf32>
    %cst_40 = arith.constant dense<0.000000e+00> : vector<16xf32>
    %143 = vector.multi_reduction <add>, %142, %cst_40 [1] : vector<16x32xf32> to vector<16xf32>
    %144 = vector.shape_cast %143 : vector<16xf32> to vector<16x1xf32>
    %cst_41 = arith.constant 3.200000e+01 : f32
    %145 = vector.broadcast %cst_41 : f32 to vector<16x1xf32>
    %146 = arith.divf %144, %145 : vector<16x1xf32>
    %147 = vector.broadcast %139 : vector<16x1xf32> to vector<16x32xf32>
    %148 = arith.subf %135, %147 : vector<16x32xf32>
    %cst_42 = arith.constant 9.99999974E-6 : f32
    %149 = vector.broadcast %cst_42 : f32 to vector<16x1xf32>
    %150 = arith.addf %146, %149 : vector<16x1xf32>
    %151 = math.rsqrt %150 : vector<16x1xf32>
    %152 = vector.broadcast %151 : vector<16x1xf32> to vector<16x32xf32>
    %153 = arith.mulf %148, %152 : vector<16x32xf32>
    %154 = arith.mulf %153, %15 : vector<16x32xf32>
    %155 = arith.addf %154, %18 : vector<16x32xf32>
    %cst_43 = arith.constant dense<0.000000e+00> : vector<16x64xf32>
    %156 = tpu.matmul %155, %4, %cst_43 {dimension_numbers = #tpu.dot_dimension_numbers<[1], [0], [0], [1], [0, 0, 1, 1], [], []>} : vector<16x32xf32>, vector<32x64xf32>, vector<16x64xf32> -> vector<16x64xf32>
    %157 = arith.addf %156, %21 : vector<16x64xf32>
    %cst_44 = arith.constant 0.000000e+00 : f32
    %158 = vector.broadcast %cst_44 : f32 to vector<16x64xf32>
    %159 = arith.maximumf %157, %158 : vector<16x64xf32>
    %cst_45 = arith.constant dense<0.000000e+00> : vector<16x32xf32>
    %160 = tpu.matmul %159, %5, %cst_45 {dimension_numbers = #tpu.dot_dimension_numbers<[1], [0], [0], [1], [0, 0, 1, 1], [], []>} : vector<16x64xf32>, vector<64x32xf32>, vector<16x32xf32> -> vector<16x32xf32>
    %161 = arith.addf %160, %24 : vector<16x32xf32>
    %162 = arith.addf %155, %161 : vector<16x32xf32>
    %cst_46 = arith.constant dense<0.000000e+00> : vector<16xf32>
    %163 = vector.multi_reduction <add>, %162, %cst_46 [1] : vector<16x32xf32> to vector<16xf32>
    %164 = vector.shape_cast %163 : vector<16xf32> to vector<16x1xf32>
    %cst_47 = arith.constant 3.200000e+01 : f32
    %165 = vector.broadcast %cst_47 : f32 to vector<16x1xf32>
    %166 = arith.divf %164, %165 : vector<16x1xf32>
    %167 = vector.broadcast %166 : vector<16x1xf32> to vector<16x32xf32>
    %168 = arith.subf %162, %167 : vector<16x32xf32>
    %169 = arith.mulf %168, %168 : vector<16x32xf32>
    %cst_48 = arith.constant dense<0.000000e+00> : vector<16xf32>
    %170 = vector.multi_reduction <add>, %169, %cst_48 [1] : vector<16x32xf32> to vector<16xf32>
    %171 = vector.shape_cast %170 : vector<16xf32> to vector<16x1xf32>
    %cst_49 = arith.constant 3.200000e+01 : f32
    %172 = vector.broadcast %cst_49 : f32 to vector<16x1xf32>
    %173 = arith.divf %171, %172 : vector<16x1xf32>
    %174 = vector.broadcast %166 : vector<16x1xf32> to vector<16x32xf32>
    %175 = arith.subf %162, %174 : vector<16x32xf32>
    %cst_50 = arith.constant 9.99999974E-6 : f32
    %176 = vector.broadcast %cst_50 : f32 to vector<16x1xf32>
    %177 = arith.addf %173, %176 : vector<16x1xf32>
    %178 = math.rsqrt %177 : vector<16x1xf32>
    %179 = vector.broadcast %178 : vector<16x1xf32> to vector<16x32xf32>
    %180 = arith.mulf %175, %179 : vector<16x32xf32>
    %181 = arith.mulf %180, %27 : vector<16x32xf32>
    %182 = arith.addf %181, %30 : vector<16x32xf32>
    %183 = vector.shape_cast %182 : vector<16x32xf32> to vector<2x8x32xf32>
    %c0_51 = arith.constant 0 : index
    %c0_52 = arith.constant 0 : index
    %c0_53 = arith.constant 0 : index
    %184 = vector.load %arg7[%c0_51, %c0_52, %c0_53] : memref<2x8x32xf32, #tpu.memory_space<vmem>>, vector<2x8x32xf32>
    tpu.vector_store %arg7[%c0_51, %c0_52, %c0_53], %183 {strides = array<i32>} : memref<2x8x32xf32, #tpu.memory_space<vmem>>, vector<2x8x32xf32>,
    return
  }
  func.func @transform_0(%arg0: i32) -> (i32, i32, i32) {
    %c0_i32 = arith.constant 0 : i32
    %c0_i32_0 = arith.constant 0 : i32
    %c0_i32_1 = arith.constant 0 : i32
    return %arg0, %c0_i32, %c0_i32_0 : i32, i32, i32
  }
  func.func @transform_1(%arg0: i32) -> (i32, i32) {
    %c0_i32 = arith.constant 0 : i32
    %c0_i32_0 = arith.constant 0 : i32
    %c0_i32_1 = arith.constant 0 : i32
    return %c0_i32, %c0_i32_0 : i32, i32
  }
  func.func @transform_2(%arg0: i32) -> (i32, i32) {
    %c0_i32 = arith.constant 0 : i32
    %c0_i32_0 = arith.constant 0 : i32
    %c0_i32_1 = arith.constant 0 : i32
    return %c0_i32, %c0_i32_0 : i32, i32
  }
  func.func @transform_3(%arg0: i32) -> (i32, i32) {
    %c0_i32 = arith.constant 0 : i32
    %c0_i32_0 = arith.constant 0 : i32
    %c0_i32_1 = arith.constant 0 : i32
    return %c0_i32, %c0_i32_0 : i32, i32
  }
  func.func @transform_4(%arg0: i32) -> (i32, i32) {
    %c0_i32 = arith.constant 0 : i32
    %c0_i32_0 = arith.constant 0 : i32
    %c0_i32_1 = arith.constant 0 : i32
    return %c0_i32, %c0_i32_0 : i32, i32
  }
  func.func @transform_5(%arg0: i32) -> (i32, i32) {
    %c0_i32 = arith.constant 0 : i32
    %c0_i32_0 = arith.constant 0 : i32
    %c0_i32_1 = arith.constant 0 : i32
    return %c0_i32, %c0_i32_0 : i32, i32
  }
  func.func @transform_6(%arg0: i32) -> (i32, i32, i32) {
    %c0_i32 = arith.constant 0 : i32
    %c0_i32_0 = arith.constant 0 : i32
    %c0_i32_1 = arith.constant 0 : i32
    return %arg0, %c0_i32, %c0_i32_0 : i32, i32, i32
  }
}

</mosaic_0001>

<bundles_post_ra>
// kernel: tpu_custom_call.1
= control target key start
LH: loop header
LB: loop body
LE: loop exit
PB: predicated region body
PF: predicated region fallthrough
CT: control target
= control target key end

     0   :  { %11 = vsyncpa [#allocation3], 0  ;;  %s7605_s0 = inlined_call_operand.hbm [shape: f32[2,8,32], index: 0, kind: input, shape index: {}]   ;;  %s7606_s1 = inlined_call_operand.vmem [shape: f32[32,96], index: 1, kind: input, shape index: {}]   ;;  %s7607_s2 = inlined_call_operand.vmem [shape: f32[32,32], index: 2, kind: input, shape index: {}]   ;;  %s7608_s3 = inlined_call_operand.vmem [shape: f32[32,64], index: 3, kind: input, shape index: {}]   ;;  %s7609_s4 = inlined_call_operand.vmem [shape: f32[64,32], index: 4, kind: input, shape index: {}]   ;;  %s7610_s5 = inlined_call_operand.vmem [shape: f32[8,128], index: 5, kind: input, shape index: {}]   ;;  %s7611_s6 = inlined_call_operand.hbm [shape: f32[2,8,32], index: 6, kind: output, shape index: {}]  }
   0x1   :  { %12 = vsyncpa [#allocation4], 0  ;;  %s6510_s21 = smov [#allocation2]  }
   0x2   :  { %s18_s22 = sshll.u32 %s6510_s21, 4  ;;  %s19_s22 = int_to_ptr.vmem [resolvable:$true] %s18_s22 }
   0x3   :  { %s6474_s23 = scalar_lea.vmem %s19_s22, 256  ;;  %p6479_p1 = scmp.lt.s32.totalorder %s19_s22, %s19_s22 }
   0x4   :  { %p6475_p0 = scmp.ne.s32.totalorder %s19_s22, %s6474_s23  ;;  %p6480_p2 = scmp.lt.s32.totalorder %s6474_s23, %s6474_s23 }
   0x6   :  { %p6481_p3 = por %p6480_p2, %p6479_p1 }
   0x8   :  { %p6482_p4 = pnand %p6481_p3, %p6475_p0 }
   0xa   :  { %6485 = shalt.err (!%p6482_p4)
}
   0xb   :  { %s6511_s24 = smov 128   ;;  %s6512_s25 = smov 8  }
   0xc   :  { %24 = dma.hbm_to_vmem [thread:$0]  %s7605_s0, 256, %s19_s22, [#allocation3], %s6511_s24, %s6511_s24, %s6512_s25  }
   0xd   :  { %6506 = dma.done.wait [#allocation3], 256  }
   0xe   :  { %6507 = vsyncadd [#allocation3], 4294967040  ;;  %vm93_vm0 = vcmask 261120   ;;  %v43_v0 = vld [vmem:[%s7606_s1 + $0x18] sm:$0xff]  ;;  %v42_v1 = vld [vmem:[%s7606_s1 + $0x10] sm:$0xff]  ;;  %v61_v6 = vlaneseq  ;;  %s6513_s13 = smov 96  }
   0xf   :  { %6078 = vmatprep.subr.mxu1 %v43_v0  ;;  %v38_v2 = vld [vmem:[#allocation2] sm:$0xff]  ;;  %v41_v3 = vld [vmem:[%s7606_s1 + $0x8] sm:$0xff]  ;;  %s6514_s14 = smov 80   ;;  %s6515_s15 = smov 88   ;;  %v6520_v15 = vmov 0.0   ;;  %vm6522_vm1 = vmmov 0  }
  0x10   :  { %6079 = vmatpush3.msra.mxu1 %v43_v0  ;;  %6086 = vmatprep.mubr.msk.f32.mxu1 %vm93_vm0, %v38_v2  ;;  %v40_v4 = vld [vmem:[%s7606_s1] sm:$0xff]  ;;  %v39_v5 = vld [vmem:[#allocation2 + $0x8] sm:$0xff]  ;;  %v6586_v7 = vshrl.u32 %v61_v6, 7  ;;  %s6516_s16 = smov 72   ;;  %s6517_s17 = smov 120   ;;  %vm1059_vm2 = vcmask 64512  }
  0x11   :  { %6080 = vmatprep.subr.mxu1 %v42_v1  ;;  %v60_v9 = vld [vmem:[%s7610_s5] sm:$0xff]  ;;  %s6518_s18 = smov 112   ;;  %s6519_s19 = smov 104   ;;  %6099 = vmatprep.subr.mxu0 %v6520_v15  ;;  %v6526_v16 = vmov 1983009808   ;;  %vm2646_vm3 = vcmask 130048  }
  0x12   :  { %6081 = vmatpush3.msra.mxu1 %v42_v1  ;;  %v63_v8 = vsub.s32 0, %v6586_v7  ;;  %s6521_s20 = smov 64   ;;  %6101 = vmatprep.mubr.msk.f32.mxu0 %vm6522_vm1, %v6520_v15  ;;  %s6523_s21 = smov 56   ;;  %v246_v17 = vunpack.c.l.s4 %v6526_v16  ;;  %v6527_v19 = vmov 1934713408   ;;  %vm2649_vm4 = vcmask 195584  }
  0x13   :  { %6082 = vmatprep.subr.mxu1 %v41_v3  ;;  %s6524_s22 = smov 48   ;;  %s6525_s23 = smov 40   ;;  %v310_v20 = vunpack.c.l.s4 %v6527_v19  ;;  %vm2849_vm5 = vcmask 523264  }
  0x14   :  { %6083 = vmatpush3.msra.mxu1 %v41_v3  ;;  %v6592_v10 = vrot.slane %v60_v9, %v63_v8  ;;  %v247_v22 = vunpack.c.0.s8 %v246_v17  ;;  %s6528_s26 = smov 16   ;;  %s6529_s29 = smov 24  }
  0x15   :  { %6084 = vmatprep.subr.mxu1 %v40_v4  ;;  %v311_v24 = vunpack.c.0.s8 %v310_v20 }
  0x16   :  { %6085 = vmatpush3.msra.mxu1 %v40_v4  ;;  %v6645_v26 = vsub.s32 %v247_v22, %v6586_v7 }
  0x17   :  { %6087 = vmatmul.mubr.msk.f32.vlgmr.msra.gmra.mxu1 %vm93_vm0, %v39_v5  ;;  %6089 = vmatprep.subr.mxu1 %v6520_v15  ;;  %v6648_v32 = vsub.s32 %v311_v24, %v6586_v7 }
  0x18   :  { %6091 = vmatprep.mubr.msk.f32.mxu1 %vm6522_vm1, %v6520_v15 }
  0xd7   :  { %v6088_v11 = vpop.f32.mrf.mxu1 }
  0xd8   :  { %v6595_v12 = vadd.f32 %v6088_v11, %v6592_v10 }
  0xd9   :  { %v166_v13 = vpop.f32.mrf.mxu1 }
  0xda   :  { %v6598_v14 = vadd.f32 %v166_v13, %v6592_v10  ;;  %197 = vrot.lane.b32.xlu1 %v6595_v12, %s6513_s13 }
  0xdc   :  { %195 = vrot.lane.b32.xlu0 %v6598_v14, %s6513_s13 }
  0xde   :  { %207 = vrot.lane.b32.xlu1 %v6598_v14, %s6514_s14 }
  0xe0   :  { %201 = vrot.lane.b32.xlu0 %v6598_v14, %s6515_s15 }
  0xe2   :  { %213 = vrot.lane.b32.xlu1 %v6598_v14, %s6516_s16 }
  0xe4   :  { %177 = vrot.lane.b32.xlu0 %v6598_v14, %s6517_s17 }
  0xe6   :  { %183 = vrot.lane.b32.xlu1 %v6598_v14, %s6518_s18 }
  0xe8   :  { %189 = vrot.lane.b32.xlu0 %v6598_v14, %s6519_s19 }
  0xea   :  { %209 = vrot.lane.b32.xlu1 %v6595_v12, %s6514_s14 }
  0xec   :  { %203 = vrot.lane.b32.xlu0 %v6595_v12, %s6515_s15 }
  0xee   :  { %179 = vrot.lane.b32.xlu1 %v6595_v12, %s6517_s17 }
  0xf0   :  { %215 = vrot.lane.b32.xlu0 %v6595_v12, %s6516_s16 }
  0xf2   :  { %191 = vrot.lane.b32.xlu1 %v6595_v12, %s6519_s19 }
  0xf4   :  { %185 = vrot.lane.b32.xlu0 %v6595_v12, %s6518_s18 }
  0xf6   :  { %219 = vrot.lane.b32.xlu1 %v6598_v14, %s6521_s20 }
  0xf8   :  { %225 = vrot.lane.b32.xlu0 %v6598_v14, %s6523_s21 }
  0xfa   :  { %231 = vrot.lane.b32.xlu1 %v6598_v14, %s6524_s22 }
  0xfe   :  { %237 = vrot.lane.b32.xlu1 %v6598_v14, %s6525_s23 }
 0x14c   :  { %v6642_v18 = vpop.permute.xlu1 %197 }
 0x14e   :  { %v196_v21 = vpop.permute.xlu0 %195 }
 0x150   :  { %v208_v23 = vpop.permute.xlu1 %207 }
 0x151   :  { %v275_v27 = vcombine.low %v196_v21, %v208_v23  ;;  %v276_v28 = vcombine.high %v196_v21, %v208_v23 }
 0x152   :  { %v202_v25 = vpop.permute.xlu0 %201 }
 0x153   :  { %v283_v34 = vrot.slane %v275_v27, %v6645_v26  ;;  %v290_v35 = vrot.slane %v276_v28, %v6645_v26 }
 0x154   :  { %v214_v29 = vpop.permute.xlu1 %213 }
 0x155   :  { %v291_v30 = vcombine.low %v202_v25, %v214_v29  ;;  %v292_v31 = vcombine.high %v202_v25, %v214_v29 }
 0x156   :  { %v178_v33 = vpop.permute.xlu0 %177 }
 0x157   :  { %v299_v36 = vrot.slane %v291_v30, %v6645_v26  ;;  %v306_v37 = vrot.slane %v292_v31, %v6645_v26 }
 0x158   :  { %v184_v38 = vpop.permute.xlu1 %183 }
 0x159   :  { %v339_v39 = vcombine.low %v283_v34, %v299_v36  ;;  %v340_v40 = vcombine.high %v283_v34, %v299_v36  ;;  %v355_v41 = vcombine.low %v290_v35, %v306_v37  ;;  %v356_v42 = vcombine.high %v290_v35, %v306_v37 }
 0x15a   :  { %v243_v43 = vcombine.low %v6598_v14, %v184_v38  ;;  %v244_v44 = vcombine.high %v6598_v14, %v184_v38  ;;  %v190_v45 = vpop.permute.xlu0 %189 }
 0x15b   :  { %v347_v46 = vrot.slane %v339_v39, %v6648_v32  ;;  %v354_v47 = vrot.slane %v340_v40, %v6648_v32  ;;  %v363_v48 = vrot.slane %v355_v41, %v6648_v32  ;;  %v370_v49 = vrot.slane %v356_v42, %v6648_v32 }
 0x15c   :  { %v251_v50 = vrot.slane %v243_v43, %v6645_v26  ;;  %v258_v51 = vrot.slane %v244_v44, %v6645_v26  ;;  %v259_v52 = vcombine.low %v178_v33, %v190_v45  ;;  %v260_v53 = vcombine.high %v178_v33, %v190_v45  ;;  %v210_v54 = vpop.permute.xlu1 %209 }
 0x15d   :  { %v5849_v55 = vcombine.low %v347_v46, %v354_v47  ;;  %v5851_v56 = vcombine.high %v347_v46, %v354_v47  ;;  %v5853_v57 = vcombine.low %v363_v48, %v370_v49  ;;  %v5855_v58 = vcombine.high %v363_v48, %v370_v49 }
 0x15e   :  { %v267_v59 = vrot.slane %v259_v52, %v6645_v26  ;;  %v274_v60 = vrot.slane %v260_v53, %v6645_v26  ;;  %v479_v61 = vcombine.low %v6642_v18, %v210_v54  ;;  %v480_v62 = vcombine.high %v6642_v18, %v210_v54  ;;  %v204_v63 = vpop.permute.xlu0 %203 }
 0x15f   :  { %v6667_v0 = vrot.slane %v5849_v55, %v6645_v26  ;;  %v6670_v1 = vrot.slane %v5851_v56, %v6645_v26  ;;  %v6673_v2 = vrot.slane %v5853_v57, %v6645_v26  ;;  %v6676_v3 = vrot.slane %v5855_v58, %v6645_v26 }
 0x160   :  { %v307_v4 = vcombine.low %v251_v50, %v267_v59  ;;  %v308_v5 = vcombine.high %v251_v50, %v267_v59  ;;  %v323_v6 = vcombine.low %v258_v51, %v274_v60  ;;  %v324_v8 = vcombine.high %v258_v51, %v274_v60  ;;  %v180_v9 = vpop.permute.xlu1 %179 }
 0x161   :  { %v731_v11 = vcombine.low %v6667_v0, %v6670_v1  ;;  %v763_v13 = vcombine.low %v6673_v2, %v6676_v3  ;;  %v487_v14 = vrot.slane %v479_v61, %v6645_v26  ;;  %v494_v21 = vrot.slane %v480_v62, %v6645_v26 }
 0x162   :  { %v315_v16 = vrot.slane %v307_v4, %v6648_v32  ;;  %v322_v17 = vrot.slane %v308_v5, %v6648_v32  ;;  %v331_v18 = vrot.slane %v323_v6, %v6648_v32  ;;  %v338_v19 = vrot.slane %v324_v8, %v6648_v32  ;;  %v216_v20 = vpop.permute.xlu0 %215 }
 0x163   :  { %v495_v22 = vcombine.low %v204_v63, %v216_v20  ;;  %v496_v23 = vcombine.high %v204_v63, %v216_v20  ;;  %v6689_v24 = vrot.slane %v731_v11, %v6648_v32  ;;  %v6694_v35 = vrot.slane %v763_v13, %v6648_v32 }
 0x164   :  { %v5848_v25 = vcombine.low %v315_v16, %v322_v17  ;;  %v5850_v27 = vcombine.high %v315_v16, %v322_v17  ;;  %v5852_v28 = vcombine.low %v331_v18, %v338_v19  ;;  %v5854_v29 = vcombine.high %v331_v18, %v338_v19  ;;  %v192_v30 = vpop.permute.xlu1 %191 }
 0x165   :  { %v503_v31 = vrot.slane %v495_v22, %v6645_v26  ;;  %v510_v33 = vrot.slane %v496_v23, %v6645_v26  ;;  %v463_v34 = vcombine.low %v180_v9, %v192_v30  ;;  %v464_v47 = vcombine.high %v180_v9, %v192_v30 }
 0x166   :  { %v6697_v36 = vrot.slane %v5848_v25, %v6645_v26  ;;  %v6700_v37 = vrot.slane %v5850_v27, %v6645_v26  ;;  %v6703_v38 = vrot.slane %v5852_v28, %v6645_v26  ;;  %v6706_v39 = vrot.slane %v5854_v29, %v6645_v26  ;;  %v186_v44 = vpop.permute.xlu0 %185 }
 0x167   :  { %v543_v40 = vcombine.low %v487_v14, %v503_v31  ;;  %v544_v41 = vcombine.high %v487_v14, %v503_v31  ;;  %v559_v42 = vcombine.low %v494_v21, %v510_v33  ;;  %v560_v43 = vcombine.high %v494_v21, %v510_v33 }
 0x168   :  { %v715_v45 = vcombine.low %v6697_v36, %v6700_v37  ;;  %v747_v46 = vcombine.low %v6703_v38, %v6706_v39  ;;  %v471_v48 = vrot.slane %v463_v34, %v6645_v26  ;;  %v220_v49 = vpop.permute.xlu1 %219  ;;  %v447_v54 = vcombine.low %v6595_v12, %v186_v44 }
 0x169   :  { %v551_v50 = vrot.slane %v543_v40, %v6648_v32  ;;  %v558_v51 = vrot.slane %v544_v41, %v6648_v32  ;;  %v567_v52 = vrot.slane %v559_v42, %v6648_v32  ;;  %v574_v53 = vrot.slane %v560_v43, %v6648_v32 }
 0x16a   :  { %v448_v55 = vcombine.high %v6595_v12, %v186_v44  ;;  %v783_v56 = vcombine.low %v6689_v24, %v6694_v35  ;;  %v732_v57 = vcombine.high %v6667_v0, %v6670_v1  ;;  %v478_v62 = vrot.slane %v464_v47, %v6645_v26 }
 0x16b   :  { %v5859_v58 = vcombine.low %v551_v50, %v558_v51  ;;  %v5861_v59 = vcombine.high %v551_v50, %v558_v51  ;;  %v5863_v60 = vcombine.low %v567_v52, %v574_v53  ;;  %v5865_v61 = vcombine.high %v567_v52, %v574_v53 }
 0x16c   :  { %v455_v63 = vrot.slane %v447_v54, %v6645_v26  ;;  %v462_v4 = vrot.slane %v448_v55, %v6645_v26  ;;  %6090 = vmatpush3.xpose.msk.msra.mxu1 %vm1059_vm2, %v783_v56  ;;  %v764_v5 = vcombine.high %v6673_v2, %v6676_v3  ;;  %v232_v16 = vpop.permute.xlu1 %231  ;;  %v6749_v18 = vrot.slane %v732_v57, %v6648_v32  ;;  %v226_v56 = vpop.permute.xlu0 %225 }
 0x16d   :  { %v6730_v6 = vrot.slane %v5859_v58, %v6645_v26  ;;  %v6733_v0 = vrot.slane %v5861_v59, %v6645_v26  ;;  %v6736_v1 = vrot.slane %v5863_v60, %v6645_v26  ;;  %v6739_v8 = vrot.slane %v5865_v61, %v6645_v26  ;;  %6094 = vmatprep.subr.mxu1 %v6520_v15 }
 0x16e   :  { %v511_v9 = vcombine.low %v455_v63, %v471_v48  ;;  %v512_v11 = vcombine.high %v455_v63, %v471_v48  ;;  %v527_v13 = vcombine.low %v462_v4, %v478_v62  ;;  %v528_v14 = vcombine.high %v462_v4, %v478_v62 }
 0x16f   :  { %v935_v2 = vcombine.low %v6730_v6, %v6733_v0  ;;  %v936_v3 = vcombine.high %v6730_v6, %v6733_v0  ;;  %v967_v17 = vcombine.low %v6736_v1, %v6739_v8  ;;  %v968_v23 = vcombine.high %v6736_v1, %v6739_v8 }
 0x170   :  { %v519_v19 = vrot.slane %v511_v9, %v6648_v32  ;;  %v526_v20 = vrot.slane %v512_v11, %v6648_v32  ;;  %v535_v21 = vrot.slane %v527_v13, %v6648_v32  ;;  %v542_v22 = vrot.slane %v528_v14, %v6648_v32 }
 0x171   :  { %v6758_v25 = vrot.slane %v764_v5, %v6648_v32  ;;  %v379_v27 = vcombine.low %v220_v49, %v232_v16  ;;  %v380_v28 = vcombine.high %v220_v49, %v232_v16  ;;  %v723_v42 = vrot.slane %v715_v45, %v6648_v32  ;;  %v238_v49 = vpop.permute.xlu1 %237 }
 0x172   :  { %v5858_v29 = vcombine.low %v519_v19, %v526_v20  ;;  %v5860_v30 = vcombine.high %v519_v19, %v526_v20  ;;  %v5862_v31 = vcombine.low %v535_v21, %v542_v22  ;;  %v5864_v33 = vcombine.high %v535_v21, %v542_v22 }
 0x173   :  { %v785_v34 = vcombine.low %v6749_v18, %v6758_v25  ;;  %v786_v40 = vcombine.high %v6749_v18, %v6758_v25  ;;  %v387_v41 = vrot.slane %v379_v27, %v6645_v26  ;;  %v394_v50 = vrot.slane %v380_v28, %v6645_v26 }
 0x174   :  { %v6767_v43 = vrot.slane %v5858_v29, %v6645_v26  ;;  %v6770_v44 = vrot.slane %v5860_v30, %v6645_v26  ;;  %v6773_v47 = vrot.slane %v5862_v31, %v6645_v26  ;;  %v6776_v48 = vrot.slane %v5864_v33, %v6645_v26 }
 0x175   :  { %6100 = vmatpush3.xpose.msk.msra.mxu0 %vm1059_vm2, %v785_v34  ;;  %v755_v51 = vrot.slane %v747_v46, %v6648_v32  ;;  %v716_v45 = vcombine.high %v6697_v36, %v6700_v37  ;;  %v748_v52 = vcombine.high %v6703_v38, %v6706_v39  ;;  %v784_v57 = vcombine.high %v6689_v24, %v6694_v35 }
 0x176   :  { %v919_v53 = vcombine.low %v6767_v43, %v6770_v44  ;;  %v920_v54 = vcombine.high %v6767_v43, %v6770_v44  ;;  %v951_v55 = vcombine.low %v6773_v47, %v6776_v48  ;;  %6109 = vmatprep.subr.mxu0 %v6520_v15  ;;  %v395_v38 = vcombine.low %v226_v56, %v238_v49 }
 0x177   :  { %v779_v46 = vcombine.low %v723_v42, %v755_v51  ;;  %v730_v36 = vrot.slane %v716_v45, %v6648_v32  ;;  %v762_v37 = vrot.slane %v748_v52, %v6648_v32  ;;  %v952_v39 = vcombine.high %v6773_v47, %v6776_v48 }
 0x178   :  { %v396_v58 = vcombine.high %v226_v56, %v238_v49  ;;  %v943_v59 = vrot.slane %v935_v2, %v6648_v32  ;;  %v975_v60 = vrot.slane %v967_v17, %v6648_v32  ;;  %v403_v24 = vrot.slane %v395_v38, %v6645_v26 }
 0x179   :  { %6092 = vmatmul.mubr.msk.f32.vlgmr.msra.gmra.mxu1 %vm1059_vm2, %v779_v46  ;;  %v781_v61 = vcombine.low %v730_v36, %v762_v37  ;;  %v780_v35 = vcombine.high %v723_v42, %v755_v51  ;;  %v927_v62 = vrot.slane %v919_v53, %v6648_v32  ;;  %v782_v63 = vcombine.high %v730_v36, %v762_v37 }
 0x17a   :  { %6095 = vmatpush3.xpose.msk.msra.mxu1 %vm1059_vm2, %v784_v57  ;;  %v410_v4 = vrot.slane %v396_v58, %v6645_v26  ;;  %6096 = vmatprep.mubr.msk.f32.mxu1 %vm6522_vm1, %v6520_v15  ;;  %v987_v5 = vcombine.low %v943_v59, %v975_v60  ;;  %v411_v6 = vcombine.low %v387_v41, %v403_v24 }
 0x17b   :  { %6102 = vmatmul.mubr.msk.f32.vlgmr.msra.gmra.mxu0 %vm1059_vm2, %v781_v61  ;;  %v412_v0 = vcombine.high %v387_v41, %v403_v24  ;;  %6104 = vmatprep.subr.mxu1 %v6520_v15  ;;  %v959_v9 = vrot.slane %v951_v55, %v6648_v32  ;;  %v950_v14 = vrot.slane %v936_v3, %v6648_v32 }
 0x17c   :  { %v427_v11 = vcombine.low %v394_v50, %v410_v4  ;;  %v428_v13 = vcombine.high %v394_v50, %v410_v4  ;;  %6110 = vmatpush3.xpose.msk.msra.mxu0 %vm1059_vm2, %v987_v5  ;;  %6111 = vmatprep.mubr.msk.f32.mxu0 %vm6522_vm1, %v6520_v15  ;;  %v419_v16 = vrot.slane %v411_v6, %v6648_v32 }
 0x17d   :  { %v426_v2 = vrot.slane %v412_v0, %v6648_v32  ;;  %6097 = vmatmul.mubr.msk.f32.vlgmr.msra.gmra.mxu1 %vm1059_vm2, %v780_v35  ;;  %6119 = vmatprep.subr.mxu0 %v6520_v15  ;;  %v983_v17 = vcombine.low %v927_v62, %v959_v9  ;;  %v988_v20 = vcombine.high %v943_v59, %v975_v60 }
 0x17e   :  { %v435_v18 = vrot.slane %v427_v11, %v6648_v32  ;;  %v442_v19 = vrot.slane %v428_v13, %v6648_v32  ;;  %6105 = vmatpush3.xpose.msk.msra.mxu1 %vm1059_vm2, %v786_v40  ;;  %6106 = vmatprep.mubr.msk.f32.mxu1 %vm6522_vm1, %v6520_v15  ;;  %v982_v22 = vrot.slane %v968_v23, %v6648_v32 }
 0x17f   :  { %v787_v3 = vcombine.low %v419_v16, %v426_v2  ;;  %v5856_v21 = vcombine.high %v419_v16, %v426_v2  ;;  %6114 = vmatprep.subr.mxu1 %v6520_v15  ;;  %6112 = vmatmul.mubr.msk.f32.vlgmr.msra.gmra.mxu0 %vm1059_vm2, %v983_v17  ;;  %v984_v28 = vcombine.high %v927_v62, %v959_v9 }
 0x180   :  { %v803_v25 = vcombine.low %v435_v18, %v442_v19  ;;  %v5857_v27 = vcombine.high %v435_v18, %v442_v19  ;;  %6121 = vmatprep.mubr.msk.f32.mxu0 %vm6522_vm1, %v6520_v15  ;;  %v934_v29 = vrot.slane %v920_v54, %v6648_v32  ;;  %v989_v33 = vcombine.low %v950_v14, %v982_v22 }
 0x181   :  { %v794_v30 = vrot.slane %v787_v3, %v6645_v26  ;;  %v802_v31 = vrot.slane %v5856_v21, %v6645_v26  ;;  %6107 = vmatmul.mubr.msk.f32.vlgmr.msra.gmra.mxu1 %vm1059_vm2, %v782_v63  ;;  %v966_v34 = vrot.slane %v952_v39, %v6648_v32  ;;  %v990_v41 = vcombine.high %v950_v14, %v982_v22 }
 0x182   :  { %v810_v1 = vrot.slane %v803_v25, %v6645_v26  ;;  %v818_v8 = vrot.slane %v5857_v27, %v6645_v26  ;;  %6115 = vmatpush3.xpose.msk.msra.mxu1 %vm1059_vm2, %v988_v20  ;;  %6116 = vmatprep.mubr.msk.f32.mxu1 %vm6522_vm1, %v6520_v15 }
 0x183   :  { %6124 = vmatprep.subr.mxu1 %v6520_v15  ;;  %6120 = vmatpush3.xpose.msk.msra.mxu0 %vm1059_vm2, %v989_v33  ;;  %v819_v23 = vcombine.low %v794_v30, %v802_v31  ;;  %v820_v40 = vcombine.high %v794_v30, %v802_v31  ;;  %v985_v44 = vcombine.low %v934_v29, %v966_v34 }
 0x184   :  { %6129 = vmatprep.subr.mxu0 %v6520_v15  ;;  %v835_v42 = vcombine.low %v810_v1, %v818_v8  ;;  %v836_v43 = vcombine.high %v810_v1, %v818_v8  ;;  %v986_v51 = vcombine.high %v934_v29, %v966_v34 }
 0x185   :  { %6117 = vmatmul.mubr.msk.f32.vlgmr.msra.gmra.mxu1 %vm1059_vm2, %v984_v28  ;;  %v827_v47 = vrot.slane %v819_v23, %v6648_v32  ;;  %v6847_v48 = vrot.slane %v820_v40, %v6648_v32 }
 0x186   :  { %6125 = vmatpush3.xpose.msk.msra.mxu1 %vm1059_vm2, %v990_v41  ;;  %6126 = vmatprep.mubr.msk.f32.mxu1 %vm6522_vm1, %v6520_v15  ;;  %v843_v49 = vrot.slane %v835_v42, %v6648_v32  ;;  %v6854_v50 = vrot.slane %v836_v43, %v6648_v32 }
 0x187   :  { %6122 = vmatmul.mubr.msk.f32.vlgmr.msra.gmra.mxu0 %vm1059_vm2, %v985_v44  ;;  %6134 = vmatprep.subr.mxu1 %v6520_v15 }
 0x188   :  { %v851_v45 = vcombine.low %v827_v47, %v843_v49  ;;  %v852_v52 = vcombine.high %v827_v47, %v843_v49  ;;  %6131 = vmatprep.mubr.msk.f32.mxu0 %vm6522_vm1, %v6520_v15  ;;  %v853_v53 = vcombine.low %v6847_v48, %v6854_v50  ;;  %v854_v54 = vcombine.high %v6847_v48, %v6854_v50 }
 0x189   :  { %6127 = vmatmul.mubr.msk.f32.vlgmr.msra.gmra.mxu1 %vm1059_vm2, %v986_v51 }
 0x18a   :  { %6130 = vmatpush3.msra.mxu0 %v851_v45  ;;  %6135 = vmatpush3.msra.mxu1 %v852_v52 }
 0x18b   :  { %6139 = vmatprep.subr.mxu0 %v6520_v15  ;;  %6136 = vmatprep.mubr.msk.f32.mxu1 %vm6522_vm1, %v6520_v15 }
 0x18c   :  { %6144 = vmatprep.subr.mxu1 %v6520_v15 }
 0x239   :  { %v1132_v55 = vpop.f32.mrf.mxu1 }
 0x23a   :  { %v1668_v56 = vmul.f32 0.35355338, %v1132_v55 }
 0x23b   :  { %v1284_v57 = vpop.f32.mrf.mxu0  ;;  %v6093_v46 = vpop.f32.mrf.mxu1 }
 0x23c   :  { %v1670_v36 = vmul.f32 0.35355338, %v1284_v57  ;;  %v1676_v37 = vsel %vm1059_vm2, %v1668_v56, -inf }
 0x23d   :  { %v6103_v38 = vpop.f32.mrf.mxu0  ;;  %1677 = vmax.xlane.f32.xlu0 %v1676_v37  ;;  %v1208_v39 = vpop.f32.mrf.mxu1 }
 0x23e   :  { %v1669_v58 = vmul.f32 0.35355338, %v1208_v39  ;;  %v1682_v61 = vsel %vm1059_vm2, %v1670_v36, -inf }
 0x23f   :  { %v6098_v59 = vpop.f32.mrf.mxu1  ;;  %v1436_v60 = vpop.f32.mrf.mxu0 }
 0x240   :  { %v1679_v24 = vsel %vm1059_vm2, %v1669_v58, -inf  ;;  %v1672_v35 = vmul.f32 0.35355338, %v1436_v60 }
 0x241   :  { %1683 = vmax.xlane.f32.xlu0 %v1682_v61  ;;  %1680 = vmax.xlane.f32.xlu1 %v1679_v24  ;;  %v1360_v62 = vpop.f32.mrf.mxu1  ;;  %v6113_v63 = vpop.f32.mrf.mxu0 }
 0x242   :  { %v1671_v4 = vmul.f32 0.35355338, %v1360_v62  ;;  %v1688_v5 = vsel %vm1059_vm2, %v1672_v35, -inf }
 0x243   :  { %v6108_v6 = vpop.f32.mrf.mxu1 }
 0x244   :  { %v1685_v0 = vsel %vm1059_vm2, %v1671_v4, -inf }
 0x245   :  { %1686 = vmax.xlane.f32.xlu0 %v1685_v0  ;;  %v1512_v9 = vpop.f32.mrf.mxu1  ;;  %1689 = vmax.xlane.f32.xlu1 %v1688_v5 }
 0x246   :  { %v1673_v11 = vmul.f32 0.35355338, %v1512_v9 }
 0x247   :  { %v6118_v13 = vpop.f32.mrf.mxu1  ;;  %v1588_v14 = vpop.f32.mrf.mxu0 }
 0x248   :  { %v1691_v16 = vsel %vm1059_vm2, %v1673_v11, -inf  ;;  %v1674_v2 = vmul.f32 0.35355338, %v1588_v14 }
 0x249   :  { %1692 = vmax.xlane.f32.xlu0 %v1691_v16  ;;  %v1664_v17 = vpop.f32.mrf.mxu1  ;;  %v6123_v18 = vpop.f32.mrf.mxu0 }
 0x24a   :  { %v1675_v19 = vmul.f32 0.35355338, %v1664_v17  ;;  %v1694_v20 = vsel %vm1059_vm2, %v1674_v2, -inf }
 0x24b   :  { %v6128_v3 = vpop.f32.mrf.mxu1  ;;  %1695 = vmax.xlane.f32.xlu1 %v1694_v20 }
 0x24c   :  { %v1697_v21 = vsel %vm1059_vm2, %v1675_v19, -inf }
 0x24d   :  { %1698 = vmax.xlane.f32.xlu0 %v1697_v21 }
 0x25c   :  { %227 = vrot.lane.b32.xlu1 %v6595_v12, %s6523_s21 }
 0x263   :  { %221 = vrot.lane.b32.xlu0 %v6595_v12, %s6521_s20 }
 0x2c6   :  { %v1678_v22 = vpop.xlane.xlu0 %1677 }
 0x2c7   :  { %v1700_v25 = vsub.f32 %v1668_v56, %v1678_v22 }
 0x2c9   :  { %v1708_v27 = vmul.f32 1.442695, %v1700_v25 }
 0x2ca   :  { %v1681_v28 = vpop.xlane.xlu1 %1680  ;;  %v1684_v29 = vpop.xlane.xlu0 %1683 }
 0x2cb   :  { %6363 = vpow2.f32 %v1708_v27  ;;  %v1701_v30 = vsub.f32 %v1669_v58, %v1681_v28  ;;  %v1702_v31 = vsub.f32 %v1670_v36, %v1684_v29 }
 0x2cd   :  { %v1710_v33 = vmul.f32 1.442695, %v1701_v30  ;;  %v1712_v34 = vmul.f32 1.442695, %v1702_v31 }
 0x2ce   :  { %v1687_v1 = vpop.xlane.xlu0 %1686  ;;  %v1690_v8 = vpop.xlane.xlu1 %1689 }
 0x2cf   :  { %6365 = vpow2.f32 %v1710_v33  ;;  %v1703_v23 = vsub.f32 %v1671_v4, %v1687_v1  ;;  %v1704_v40 = vsub.f32 %v1672_v35, %v1690_v8 }
 0x2d0   :  { %6367 = vpow2.f32 %v1712_v34 }
 0x2d1   :  { %v1714_v41 = vmul.f32 1.442695, %v1703_v23  ;;  %v1716_v42 = vmul.f32 1.442695, %v1704_v40 }
 0x2d2   :  { %v1693_v43 = vpop.xlane.xlu0 %1692 }
 0x2d3   :  { %6369 = vpow2.f32 %v1714_v41  ;;  %v1705_v44 = vsub.f32 %v1673_v11, %v1693_v43 }
 0x2d4   :  { %6371 = vpow2.f32 %v1716_v42  ;;  %v1696_v47 = vpop.xlane.xlu1 %1695 }
 0x2d5   :  { %v1706_v49 = vsub.f32 %v1674_v2, %v1696_v47  ;;  %v1718_v51 = vmul.f32 1.442695, %v1705_v44 }
 0x2d6   :  { %v1699_v45 = vpop.xlane.xlu0 %1698 }
 0x2d7   :  { %v1720_v52 = vmul.f32 1.442695, %v1706_v49  ;;  %v1707_v55 = vsub.f32 %v1675_v19, %v1699_v45 }
 0x2d8   :  { %v6364_v56 = vpop.eup %6363  ;;  %v228_v6 = vpop.permute.xlu1 %227 }
 0x2d9   :  { %6373 = vpow2.f32 %v1720_v52  ;;  %v1722_v57 = vmul.f32 1.442695, %v1707_v55  ;;  %v1724_v46 = vsel %vm1059_vm2, %v6364_v56, 0.0 }
 0x2da   :  { %6375 = vpow2.f32 %v1718_v51  ;;  %1725 = vadd.xlane.f32.xlu1 %v1724_v46  ;;  %v222_v0 = vpop.permute.xlu0 %221 }
 0x2db   :  { %6377 = vpow2.f32 %v1722_v57 }
 0x2dc   :  { %v6366_v36 = vpop.eup %6365 }
 0x2dd   :  { %v6368_v37 = vpop.eup %6367  ;;  %v1727_v38 = vsel %vm1059_vm2, %v6366_v36, 0.0 }
 0x2de   :  { %1728 = vadd.xlane.f32.xlu0 %v1727_v38  ;;  %v1730_v39 = vsel %vm1059_vm2, %v6368_v37, 0.0 }
 0x2df   :  { %1731 = vadd.xlane.f32.xlu1 %v1730_v39 }
 0x2e0   :  { %v6370_v58 = vpop.eup %6369 }
 0x2e1   :  { %v6884_v59 = vpop.eup %6371  ;;  %v1733_v60 = vsel %vm1059_vm2, %v6370_v58, 0.0 }
 0x2e2   :  { %1734 = vadd.xlane.f32.xlu0 %v1733_v60  ;;  %v1736_v61 = vsel %vm1059_vm2, %v6884_v59, 0.0 }
 0x2e3   :  { %1737 = vadd.xlane.f32.xlu1 %v1736_v61 }
 0x2e6   :  { %v6889_v24 = vpop.eup %6373 }
 0x2e7   :  { %v6891_v35 = vpop.eup %6375  ;;  %v1742_v62 = vsel %vm1059_vm2, %v6889_v24, 0.0 }
 0x2e8   :  { %v6895_v63 = vpop.eup %6377  ;;  %1743 = vadd.xlane.f32.xlu0 %v1742_v62  ;;  %v1739_v5 = vsel %vm1059_vm2, %v6891_v35, 0.0 }
 0x2e9   :  { %v1745_v4 = vsel %vm1059_vm2, %v6895_v63, 0.0 }
 0x2ea   :  { %1746 = vadd.xlane.f32.xlu1 %v1745_v4 }
 0x2ec   :  { %1740 = vadd.xlane.f32.xlu0 %v1739_v5 }
 0x2fb   :  { %239 = vrot.lane.b32.xlu1 %v6595_v12, %s6525_s23 }
 0x302   :  { %233 = vrot.lane.b32.xlu0 %v6595_v12, %s6524_s22 }
 0x363   :  { %v1726_v9 = vpop.xlane.xlu1 %1725 }
 0x364   :  { %6379 = vrcp.f32 %v1726_v9 }
 0x367   :  { %v1729_v11 = vpop.xlane.xlu0 %1728 }
 0x368   :  { %v1732_v13 = vpop.xlane.xlu1 %1731  ;;  %6381 = vrcp.f32 %v1729_v11 }
 0x369   :  { %6383 = vrcp.f32 %v1732_v13 }
 0x36b   :  { %v1735_v14 = vpop.xlane.xlu0 %1734 }
 0x36c   :  { %6385 = vrcp.f32 %v1735_v14  ;;  %v1738_v16 = vpop.xlane.xlu1 %1737 }
 0x36d   :  { %6387 = vrcp.f32 %v1738_v16 }
 0x371   :  { %v6380_v2 = vpop.eup %6379  ;;  %v1744_v17 = vpop.xlane.xlu0 %1743 }
 0x372   :  { %v1749_v18 = vmul.f32 %v6380_v2, %v6364_v56 }
 0x373   :  { %v1747_v19 = vpop.xlane.xlu1 %1746 }
 0x374   :  { %6132 = vmatmul.mubr.msk.f32.vlgmr.msra.gmra.mxu0 %vm1059_vm2, %v1749_v18 }
 0x375   :  { %v6382_v20 = vpop.eup %6381  ;;  %6140 = vmatpush3.msra.mxu0 %v853_v53  ;;  %6141 = vmatprep.mubr.msk.f32.mxu0 %vm6522_vm1, %v6520_v15  ;;  %v1741_v12 = vpop.xlane.xlu0 %1740 }
 0x376   :  { %v6384_v3 = vpop.eup %6383  ;;  %v1751_v21 = vmul.f32 %v6382_v20, %v6366_v36  ;;  %6149 = vmatprep.subr.mxu0 %v6520_v15  ;;  %6389 = vrcp.f32 %v1741_v12 }
 0x377   :  { %v240_v22 = vpop.permute.xlu1 %239  ;;  %v1753_v25 = vmul.f32 %v6384_v3, %v6368_v37  ;;  %6391 = vrcp.f32 %v1744_v17 }
 0x378   :  { %v599_v27 = vcombine.low %v228_v6, %v240_v22  ;;  %v600_v28 = vcombine.high %v228_v6, %v240_v22  ;;  %6137 = vmatmul.mubr.msk.f32.vlgmr.msra.gmra.mxu1 %vm1059_vm2, %v1751_v21  ;;  %6393 = vrcp.f32 %v1747_v19 }
 0x379   :  { %v6386_v29 = vpop.eup %6385  ;;  %6142 = vmatmul.mubr.msk.f32.vlgmr.msra.gmra.mxu0 %vm1059_vm2, %v1753_v25  ;;  %6145 = vmatpush3.msra.mxu1 %v854_v54  ;;  %v234_v53 = vpop.permute.xlu0 %233 }
 0x37a   :  { %6146 = vmatprep.mubr.msk.f32.mxu1 %vm6522_vm1, %v6520_v15  ;;  %v583_v30 = vcombine.low %v222_v0, %v234_v53  ;;  %v584_v31 = vcombine.high %v222_v0, %v234_v53  ;;  %v1755_v33 = vmul.f32 %v6386_v29, %v6370_v58  ;;  %6154 = vmatprep.subr.mxu1 %v6520_v15  ;;  %v6388_v39 = vpop.eup %6387 }
 0x37b   :  { %6151 = vmatprep.mubr.msk.f32.mxu0 %vm6522_vm1, %v6520_v15  ;;  %v607_v34 = vrot.slane %v599_v27, %v6645_v26  ;;  %v614_v1 = vrot.slane %v600_v28, %v6645_v26  ;;  %v1757_v9 = vmul.f32 %v6388_v39, %v6884_v59 }
 0x37c   :  { %v591_v48 = vrot.slane %v583_v30, %v6645_v26  ;;  %v598_v50 = vrot.slane %v584_v31, %v6645_v26  ;;  %6147 = vmatmul.mubr.msk.f32.vlgmr.msra.gmra.mxu1 %vm1059_vm2, %v1755_v33 }
 0x37d   :  { %6156 = vmatprep.mubr.msk.f32.mxu1 %vm6522_vm1, %v6520_v15 }
 0x37e   :  { %v615_v54 = vcombine.low %v591_v48, %v607_v34  ;;  %v616_v8 = vcombine.high %v591_v48, %v607_v34  ;;  %v631_v23 = vcombine.low %v598_v50, %v614_v1  ;;  %v632_v40 = vcombine.high %v598_v50, %v614_v1 }
 0x380   :  { %v623_v41 = vrot.slane %v615_v54, %v6648_v32  ;;  %v630_v42 = vrot.slane %v616_v8, %v6648_v32  ;;  %v639_v43 = vrot.slane %v631_v23, %v6648_v32  ;;  %v646_v44 = vrot.slane %v632_v40, %v6648_v32 }
 0x382   :  { %v991_v47 = vcombine.low %v623_v41, %v630_v42  ;;  %v5866_v49 = vcombine.high %v623_v41, %v630_v42  ;;  %v1007_v51 = vcombine.low %v639_v43, %v646_v44  ;;  %v5867_v45 = vcombine.high %v639_v43, %v646_v44 }
 0x383   :  { %v6390_v58 = vpop.eup %6389 }
 0x384   :  { %v998_v52 = vrot.slane %v991_v47, %v6645_v26  ;;  %v1006_v55 = vrot.slane %v5866_v49, %v6645_v26  ;;  %v1014_v56 = vrot.slane %v1007_v51, %v6645_v26  ;;  %v1022_v57 = vrot.slane %v5867_v45, %v6645_v26  ;;  %v6392_v5 = vpop.eup %6391 }
 0x385   :  { %v1759_v11 = vmul.f32 %v6390_v58, %v6891_v35  ;;  %v6394_v13 = vpop.eup %6393  ;;  %v1761_v2 = vmul.f32 %v6392_v5, %v6889_v24 }
 0x386   :  { %v1023_v46 = vcombine.low %v998_v52, %v1006_v55  ;;  %v1039_v36 = vcombine.low %v1014_v56, %v1022_v57  ;;  %v1024_v37 = vcombine.high %v998_v52, %v1006_v55  ;;  %v1040_v38 = vcombine.high %v1014_v56, %v1022_v57 }
 0x387   :  { %v1763_v59 = vmul.f32 %v6394_v13, %v6895_v63 }
 0x388   :  { %v1031_v60 = vrot.slane %v1023_v46, %v6648_v32  ;;  %v1047_v61 = vrot.slane %v1039_v36, %v6648_v32  ;;  %v1038_v62 = vrot.slane %v1024_v37, %v6648_v32  ;;  %v1054_v4 = vrot.slane %v1040_v38, %v6648_v32 }
 0x38a   :  { %v1055_v6 = vcombine.low %v1031_v60, %v1047_v61  ;;  %v1056_v0 = vcombine.high %v1031_v60, %v1047_v61  ;;  %v1057_v14 = vcombine.low %v1038_v62, %v1054_v4  ;;  %v1058_v16 = vcombine.high %v1038_v62, %v1054_v4 }
 0x38c   :  { %6150 = vmatpush3.msra.mxu0 %v1055_v6  ;;  %6155 = vmatpush3.msra.mxu1 %v1056_v0 }
 0x38d   :  { %6152 = vmatmul.mubr.msk.f32.vlgmr.msra.gmra.mxu0 %vm1059_vm2, %v1757_v9  ;;  %6157 = vmatmul.mubr.msk.f32.vlgmr.msra.gmra.mxu1 %vm1059_vm2, %v1759_v11 }
 0x38e   :  { %6159 = vmatprep.subr.mxu0 %v6520_v15  ;;  %6164 = vmatprep.subr.mxu1 %v6520_v15 }
 0x38f   :  { %6160 = vmatpush3.msra.mxu0 %v1057_v14  ;;  %6165 = vmatpush3.msra.mxu1 %v1058_v16 }
 0x390   :  { %6161 = vmatprep.mubr.msk.f32.mxu0 %vm6522_vm1, %v6520_v15  ;;  %6166 = vmatprep.mubr.msk.f32.mxu1 %vm6522_vm1, %v6520_v15 }
 0x391   :  { %6162 = vmatmul.mubr.msk.f32.vlgmr.msra.gmra.mxu0 %vm1059_vm2, %v1761_v2  ;;  %6167 = vmatmul.mubr.msk.f32.vlgmr.msra.gmra.mxu1 %vm1059_vm2, %v1763_v59 }
 0x434   :  { %v1833_v35 = vpop.f32.mrf.mxu0 }
 0x436   :  { %v6133_v17 = vpop.f32.mrf.mxu0 }
 0x438   :  { %v1906_v18 = vpop.f32.mrf.mxu1 }
 0x439   :  { %v1979_v19 = vpop.f32.mrf.mxu0 }
 0x43a   :  { %v6138_v20 = vpop.f32.mrf.mxu1  ;;  %v2348_v3 = vcombine.low %v1833_v35, %v1979_v19  ;;  %v2349_v24 = vcombine.high %v1833_v35, %v1979_v19 }
 0x43b   :  { %v6143_v12 = vpop.f32.mrf.mxu0 }
 0x43c   :  { %v2052_v21 = vpop.f32.mrf.mxu1  ;;  %v2356_v27 = vrot.slane %v2348_v3, %v6645_v26  ;;  %v2363_v28 = vrot.slane %v2349_v24, %v6645_v26  ;;  %v47_v12 = vld [vmem:[%s7607_s2 + $0x18] sm:$0xff] }
 0x43d   :  { %v2364_v63 = vcombine.low %v1906_v18, %v2052_v21  ;;  %v2365_v22 = vcombine.high %v1906_v18, %v2052_v21  ;;  %6169 = vmatprep.subr.mxu0 %v47_v12 }
 0x43e   :  { %v6148_v25 = vpop.f32.mrf.mxu1  ;;  %6170 = vmatpush3.msra.mxu0 %v47_v12 }
 0x43f   :  { %v2372_v29 = vrot.slane %v2364_v63, %v6645_v26  ;;  %v2379_v53 = vrot.slane %v2365_v22, %v6645_v26  ;;  %v46_v22 = vld [vmem:[%s7607_s2 + $0x10] sm:$0xff] }
 0x440   :  { %6171 = vmatprep.subr.mxu0 %v46_v22 }
 0x441   :  { %v2380_v30 = vcombine.low %v2356_v27, %v2372_v29  ;;  %v2381_v31 = vcombine.high %v2356_v27, %v2372_v29  ;;  %v2396_v33 = vcombine.low %v2363_v28, %v2379_v53  ;;  %v2397_v34 = vcombine.high %v2363_v28, %v2379_v53  ;;  %v45_v53 = vld [vmem:[%s7607_s2 + $0x8] sm:$0xff]  ;;  %6172 = vmatpush3.msra.mxu0 %v46_v22  ;;  %v50_v22 = vld [vmem:[%s7608_s3 + $0x10] sm:$0xff] }
 0x442   :  { %6173 = vmatprep.subr.mxu0 %v45_v53 }
 0x443   :  { %v2388_v1 = vrot.slane %v2380_v30, %v6648_v32  ;;  %v2395_v48 = vrot.slane %v2381_v31, %v6648_v32  ;;  %v2404_v50 = vrot.slane %v2396_v33, %v6648_v32  ;;  %v2411_v54 = vrot.slane %v2397_v34, %v6648_v32  ;;  %6174 = vmatpush3.msra.mxu0 %v45_v53  ;;  %v57_v53 = vld [vmem:[%s7609_s4 + $0x28] sm:$0xff] }
 0x445   :  { %v2484_v8 = vcombine.low %v2388_v1, %v2395_v48  ;;  %v5892_v23 = vcombine.high %v2388_v1, %v2395_v48  ;;  %v2500_v40 = vcombine.low %v2404_v50, %v2411_v54  ;;  %v5893_v41 = vcombine.high %v2404_v50, %v2411_v54  ;;  %v44_v1 = vld [vmem:[%s7607_s2] sm:$0xff] }
 0x446   :  { %6175 = vmatprep.subr.mxu0 %v44_v1 }
 0x447   :  { %v2491_v42 = vrot.slane %v2484_v8, %v6645_v26  ;;  %v2499_v43 = vrot.slane %v5892_v23, %v6645_v26  ;;  %v2507_v44 = vrot.slane %v2500_v40, %v6645_v26  ;;  %v2515_v47 = vrot.slane %v5893_v41, %v6645_v26  ;;  %6176 = vmatpush3.msra.mxu0 %v44_v1 }
 0x449   :  { %v2516_v49 = vcombine.low %v2491_v42, %v2499_v43  ;;  %v2532_v51 = vcombine.low %v2507_v44, %v2515_v47  ;;  %v2517_v45 = vcombine.high %v2491_v42, %v2499_v43  ;;  %v2533_v52 = vcombine.high %v2507_v44, %v2515_v47 }
 0x44b   :  { %v6968_v55 = vrot.slane %v2516_v49, %v6648_v32  ;;  %v6971_v56 = vrot.slane %v2532_v51, %v6648_v32  ;;  %v2531_v36 = vrot.slane %v2517_v45, %v6648_v32  ;;  %v2547_v37 = vrot.slane %v2533_v52, %v6648_v32 }
 0x44d   :  { %v2125_v57 = vpop.f32.mrf.mxu0  ;;  %v2198_v46 = vpop.f32.mrf.mxu1  ;;  %v2549_v38 = vcombine.high %v6968_v55, %v6971_v56  ;;  %v2548_v39 = vcombine.low %v6968_v55, %v6971_v56  ;;  %v2550_v61 = vcombine.low %v2531_v36, %v2547_v37  ;;  %v2551_v35 = vcombine.high %v2531_v36, %v2547_v37  ;;  %v7028_v56 = vld [vmem:[%s7610_s5] sm:$0xff] }
 0x44e   :  { %v67_v55 = vsub.s32 1, %v6586_v7 }
 0x44f   :  { %v6153_v58 = vpop.f32.mrf.mxu0  ;;  %v6158_v60 = vpop.f32.mrf.mxu1  ;;  %2622 = vrot.lane.b32.xlu0 %v2549_v38, %s6512_s25 }
 0x451   :  { %v2271_v62 = vpop.f32.mrf.mxu0  ;;  %v2344_v4 = vpop.f32.mrf.mxu1 }
 0x452   :  { %v2416_v5 = vcombine.low %v2125_v57, %v2271_v62  ;;  %v2417_v6 = vcombine.high %v2125_v57, %v2271_v62  ;;  %v2432_v0 = vcombine.low %v2198_v46, %v2344_v4  ;;  %v2433_v9 = vcombine.high %v2198_v46, %v2344_v4 }
 0x453   :  { %v6163_v11 = vpop.f32.mrf.mxu0  ;;  %v6168_v13 = vpop.f32.mrf.mxu1  ;;  %2630 = vrot.lane.b32.xlu0 %v2550_v61, %s6528_s26 }
 0x454   :  { %v2424_v14 = vrot.slane %v2416_v5, %v6645_v26  ;;  %v2431_v16 = vrot.slane %v2417_v6, %v6645_v26  ;;  %v2440_v2 = vrot.slane %v2432_v0, %v6645_v26  ;;  %v2447_v59 = vrot.slane %v2433_v9, %v6645_v26  ;;  %v6444_v9 = vld [vmem:[#allocation2 + $0x8] sm:$0xff] }
 0x456   :  { %v2448_v17 = vcombine.low %v2424_v14, %v2440_v2  ;;  %v2449_v18 = vcombine.high %v2424_v14, %v2440_v2  ;;  %v2464_v19 = vcombine.low %v2431_v16, %v2447_v59  ;;  %v2465_v20 = vcombine.high %v2431_v16, %v2447_v59  ;;  %v6445_v14 = vld [vmem:[#allocation2] sm:$0xff] }
 0x457   :  { %2638 = vrot.lane.b32.xlu0 %v2551_v35, %s6529_s29 }
 0x458   :  { %v2456_v3 = vrot.slane %v2448_v17, %v6648_v32  ;;  %v2463_v24 = vrot.slane %v2449_v18, %v6648_v32  ;;  %v2472_v21 = vrot.slane %v2464_v19, %v6648_v32  ;;  %v2479_v63 = vrot.slane %v2465_v20, %v6648_v32 }
 0x45a   :  { %v2552_v25 = vcombine.low %v2456_v3, %v2463_v24  ;;  %v5894_v27 = vcombine.high %v2456_v3, %v2463_v24  ;;  %v2568_v28 = vcombine.low %v2472_v21, %v2479_v63  ;;  %v5895_v29 = vcombine.high %v2472_v21, %v2479_v63  ;;  %v51_v63 = vld [vmem:[%s7608_s3 + $0x18] sm:$0xff] }
 0x45b   :  { %6180 = vmatprep.subr.mxu1 %v51_v63 }
 0x45c   :  { %v2559_v30 = vrot.slane %v2552_v25, %v6645_v26  ;;  %v2567_v31 = vrot.slane %v5894_v27, %v6645_v26  ;;  %v2575_v33 = vrot.slane %v2568_v28, %v6645_v26  ;;  %v2583_v34 = vrot.slane %v5895_v29, %v6645_v26  ;;  %6181 = vmatpush3.msra.mxu1 %v51_v63  ;;  %v49_v25 = vld [vmem:[%s7608_s3 + $0x8] sm:$0xff]  ;;  %v48_v27 = vld [vmem:[%s7608_s3] sm:$0xff]  ;;  %v59_v28 = vld [vmem:[%s7609_s4 + $0x38] sm:$0xff] }
 0x45d   :  { %6182 = vmatprep.subr.mxu1 %v50_v22  ;;  %v58_v29 = vld [vmem:[%s7609_s4 + $0x30] sm:$0xff]  ;;  %6191 = vmatprep.subr.mxu0 %v59_v28 }
 0x45e   :  { %v2584_v48 = vcombine.low %v2559_v30, %v2567_v31  ;;  %v2600_v50 = vcombine.low %v2575_v33, %v2583_v34  ;;  %v2585_v54 = vcombine.high %v2559_v30, %v2567_v31  ;;  %v2601_v8 = vcombine.high %v2575_v33, %v2583_v34  ;;  %6183 = vmatpush3.msra.mxu1 %v50_v22  ;;  %v6446_v30 = vld [vmem:[%s7606_s1 + $0x18] sm:$0xff]  ;;  %v56_v31 = vld [vmem:[%s7609_s4 + $0x20] sm:$0xff] }
 0x45f   :  { %6184 = vmatprep.subr.mxu1 %v49_v25 }
 0x460   :  { %v2592_v23 = vrot.slane %v2584_v48, %v6648_v32  ;;  %v2608_v40 = vrot.slane %v2600_v50, %v6648_v32  ;;  %v2599_v43 = vrot.slane %v2585_v54, %v6648_v32  ;;  %v2615_v44 = vrot.slane %v2601_v8, %v6648_v32  ;;  %6185 = vmatpush3.msra.mxu1 %v49_v25 }
 0x461   :  { %6186 = vmatprep.subr.mxu1 %v48_v27  ;;  %v71_v8 = vsub.s32 2, %v6586_v7 }
 0x462   :  { %v2617_v41 = vcombine.high %v2592_v23, %v2608_v40  ;;  %v2616_v42 = vcombine.low %v2592_v23, %v2608_v40  ;;  %v2618_v47 = vcombine.low %v2599_v43, %v2615_v44  ;;  %v2619_v49 = vcombine.high %v2599_v43, %v2615_v44  ;;  %6187 = vmatpush3.msra.mxu1 %v48_v27 }
 0x463   :  { %6210 = vmatprep.subr.mxu1 %v6446_v30  ;;  %v75_v23 = vsub.s32 3, %v6586_v7  ;;  %v7069_v40 = vrot.slane %v7028_v56, %v71_v8 }
 0x464   :  { %2624 = vrot.lane.b32.xlu1 %v2617_v41, %s6512_s25 }
 0x468   :  { %2632 = vrot.lane.b32.xlu1 %v2618_v47, %s6528_s26 }
 0x46c   :  { %2640 = vrot.lane.b32.xlu1 %v2619_v49, %s6529_s29 }
 0x4c1   :  { %v2623_v51 = vpop.permute.xlu0 %2622 }
 0x4c2   :  { %v2644_v52 = vsel %vm1059_vm2, %v2548_v39, %v2623_v51  ;;  %v7031_v39 = vrot.slane %v7028_v56, %v67_v55 }
 0x4c5   :  { %v2631_v45 = vpop.permute.xlu0 %2630 }
 0x4c6   :  { %v2647_v57 = vsel %vm2646_vm3, %v2644_v52, %v2631_v45 }
 0x4c9   :  { %v2639_v46 = vpop.permute.xlu0 %2638 }
 0x4ca   :  { %v2650_v36 = vsel %vm2649_vm4, %v2647_v57, %v2639_v46  ;;  %v6447_v57 = vld [vmem:[%s7606_s1 + $0x10] sm:$0xff]  ;;  %v6448_v46 = vld [vmem:[%s7606_s1 + $0x8] sm:$0xff] }
 0x4cb   :  { %6177 = vmatprep.mubr.msk.f32.mxu0 %vm93_vm0, %v2650_v36  ;;  %v6449_v36 = vld [vmem:[%s7606_s1] sm:$0xff] }
 0x4d6   :  { %v2625_v37 = vpop.permute.xlu1 %2624 }
 0x4d7   :  { %v2645_v58 = vsel %vm1059_vm2, %v2616_v42, %v2625_v37  ;;  %v7072_v42 = vrot.slane %v7028_v56, %v75_v23  ;;  %v55_v37 = vld [vmem:[%s7609_s4 + $0x18] sm:$0xff] }
 0x4da   :  { %v2633_v38 = vpop.permute.xlu1 %2632 }
 0x4db   :  { %v2648_v60 = vsel %vm2646_vm3, %v2645_v58, %v2633_v38  ;;  %v54_v38 = vld [vmem:[%s7609_s4 + $0x10] sm:$0xff]  ;;  %v53_v58 = vld [vmem:[%s7609_s4 + $0x8] sm:$0xff] }
 0x4de   :  { %v2641_v61 = vpop.permute.xlu1 %2640 }
 0x4df   :  { %v2651_v62 = vsel %vm2649_vm4, %v2648_v60, %v2641_v61  ;;  %v52_v60 = vld [vmem:[%s7609_s4] sm:$0xff]  ;;  %v79_v61 = vsub.s32 4, %v6586_v7 }
 0x4e0   :  { %6178 = vmatmul.mubr.msk.f32.vlgmr.msra.gmra.mxu0 %vm93_vm0, %v2651_v62 }
 0x4e1   :  { %6192 = vmatpush3.msra.mxu0 %v59_v28  ;;  %v7105_v62 = vrot.slane %v7028_v56, %v79_v61 }
 0x4e2   :  { %6193 = vmatprep.subr.mxu0 %v58_v29 }
 0x4e3   :  { %6194 = vmatpush3.msra.mxu0 %v58_v29 }
 0x4e4   :  { %6195 = vmatprep.subr.mxu0 %v57_v53 }
 0x4e5   :  { %6196 = vmatpush3.msra.mxu0 %v57_v53 }
 0x4e6   :  { %6197 = vmatprep.subr.mxu0 %v56_v31 }
 0x4e7   :  { %6198 = vmatpush3.msra.mxu0 %v56_v31 }
 0x4e8   :  { %6199 = vmatprep.subr.mxu0 %v55_v37 }
 0x4e9   :  { %6200 = vmatpush3.msra.mxu0 %v55_v37 }
 0x4ea   :  { %6201 = vmatprep.subr.mxu0 %v54_v38 }
 0x4eb   :  { %6202 = vmatpush3.msra.mxu0 %v54_v38 }
 0x4ec   :  { %6203 = vmatprep.subr.mxu0 %v53_v58 }
 0x4ed   :  { %6204 = vmatpush3.msra.mxu0 %v53_v58 }
 0x4ee   :  { %6205 = vmatprep.subr.mxu0 %v52_v60 }
 0x4ef   :  { %6206 = vmatpush3.msra.mxu0 %v52_v60 }
 0x4f0   :  { %6231 = vmatprep.subr.mxu0 %v6520_v15 }
 0x5a0   :  { %v6179_v4 = vpop.f32.mrf.mxu0 }
 0x5a1   :  { %v2730_v5 = vadd.f32 %v6179_v4, %v7031_v39 }
 0x5a2   :  { %v2724_v6 = vpop.f32.mrf.mxu0 }
 0x5a3   :  { %v2725_v0 = vadd.f32 %v2724_v6, %v7031_v39  ;;  %v2734_v11 = vadd.f32 %v6444_v9, %v2730_v5 }
 0x5a5   :  { %v2738_v13 = vsel %vm93_vm0, %v2734_v11, 0.0  ;;  %v2733_v16 = vadd.f32 %v6445_v14, %v2725_v0 }
 0x5a6   :  { %2739 = vadd.xlane.f32.xlu1 %v2738_v13 }
 0x5a7   :  { %v2735_v2 = vsel %vm93_vm0, %v2733_v16, 0.0 }
 0x5a8   :  { %2736 = vadd.xlane.f32.xlu0 %v2735_v2 }
 0x62f   :  { %v2740_v59 = vpop.xlane.xlu1 %2739 }
 0x630   :  { %v2743_v35 = vmul.f32 0.03125, %v2740_v59 }
 0x631   :  { %v2737_v17 = vpop.xlane.xlu0 %2736 }
 0x632   :  { %v2742_v18 = vmul.f32 0.03125, %v2737_v17  ;;  %v2745_v19 = vsub.f32 %v2734_v11, %v2743_v35  ;;  %v83_v11 = vsub.s32 5, %v6586_v7 }
 0x634   :  { %v2744_v20 = vsub.f32 %v2733_v16, %v2742_v18  ;;  %v2747_v24 = vmul.f32 %v2745_v19, %v2745_v19  ;;  %v7115_v13 = vrot.slane %v7028_v56, %v83_v11 }
 0x636   :  { %v2746_v12 = vmul.f32 %v2744_v20, %v2744_v20  ;;  %v2751_v21 = vsel %vm93_vm0, %v2747_v24, 0.0 }
 0x638   :  { %v2748_v3 = vsel %vm93_vm0, %v2746_v12, 0.0 }
 0x639   :  { %2749 = vadd.xlane.f32.xlu0 %v2748_v3 }
 0x63d   :  { %2752 = vadd.xlane.f32.xlu0 %v2751_v21 }
 0x6c2   :  { %v2750_v33 = vpop.xlane.xlu0 %2749 }
 0x6c3   :  { %v2754_v34 = vmul.f32 0.03125, %v2750_v33 }
 0x6c5   :  { %v2756_v1 = vadd.f32 1e-05, %v2754_v34 }
 0x6c6   :  { %v2753_v48 = vpop.xlane.xlu0 %2752 }
 0x6c7   :  { %6395 = vrsqrt.f32 %v2756_v1  ;;  %v2755_v50 = vmul.f32 0.03125, %v2753_v48  ;;  %v87_v1 = vsub.s32 6, %v6586_v7 }
 0x6c9   :  { %v2757_v54 = vadd.f32 1e-05, %v2755_v50  ;;  %v7125_v50 = vrot.slane %v7028_v56, %v87_v1 }
 0x6cb   :  { %6397 = vrsqrt.f32 %v2757_v54  ;;  %v91_v54 = vsub.s32 7, %v6586_v7 }
 0x6d4   :  { %v6396_v41 = vpop.eup %6395 }
 0x6d5   :  { %v2760_v43 = vmul.f32 %v6396_v41, %v2744_v20 }
 0x6d7   :  { %v2762_v44 = vmul.f32 %v2760_v43, %v7069_v40  ;;  %v7129_v43 = vrot.slane %v7028_v56, %v91_v54 }
 0x6d8   :  { %v6398_v47 = vpop.eup %6397 }
 0x6d9   :  { %v2761_v49 = vmul.f32 %v6398_v47, %v2745_v19  ;;  %v2764_v51 = vadd.f32 %v2762_v44, %v7072_v42 }
 0x6db   :  { %6188 = vmatprep.mubr.msk.f32.mxu1 %vm93_vm0, %v2764_v51  ;;  %v2763_v45 = vmul.f32 %v2761_v49, %v7069_v40 }
 0x6dd   :  { %v2765_v52 = vadd.f32 %v2763_v45, %v7072_v42 }
 0x6df   :  { %6189 = vmatmul.mubr.msk.f32.vlgmr.msra.gmra.mxu1 %vm93_vm0, %v2765_v52 }
 0x6e0   :  { %6211 = vmatpush3.msra.mxu1 %v6446_v30 }
 0x6e1   :  { %6212 = vmatprep.subr.mxu1 %v6447_v57 }
 0x6e2   :  { %6213 = vmatpush3.msra.mxu1 %v6447_v57 }
 0x6e3   :  { %6214 = vmatprep.subr.mxu1 %v6448_v46 }
 0x6e4   :  { %6215 = vmatpush3.msra.mxu1 %v6448_v46 }
 0x6e5   :  { %6216 = vmatprep.subr.mxu1 %v6449_v36 }
 0x6e6   :  { %6217 = vmatpush3.msra.mxu1 %v6449_v36 }
 0x6e7   :  { %6221 = vmatprep.subr.mxu1 %v6520_v15 }
 0x79f   :  { %v6190_v55 = vpop.f32.mrf.mxu1 }
 0x7a0   :  { %v2844_v4 = vadd.f32 %v6190_v55, %v7105_v62 }
 0x7a1   :  { %v2838_v5 = vpop.f32.mrf.mxu1 }
 0x7a2   :  { %v2839_v6 = vadd.f32 %v2838_v5, %v7105_v62  ;;  %v2848_v9 = vmax.f32 %v2844_v4, 0.0 }
 0x7a4   :  { %v2847_v0 = vmax.f32 %v2839_v6, 0.0 }
 0x7a6   :  { %6207 = vmatprep.mubr.msk.f32.mxu0 %vm2849_vm5, %v2847_v0 }
 0x7a7   :  { %6208 = vmatmul.mubr.msk.f32.vlgmr.msra.gmra.mxu0 %vm2849_vm5, %v2848_v9 }
 0x7a8   :  { %6233 = vmatprep.mubr.msk.f32.mxu0 %vm6522_vm1, %v6520_v15 }
 0x867   :  { %v6209_v14 = vpop.f32.mrf.mxu0 }
 0x868   :  { %v2928_v16 = vadd.f32 %v6209_v14, %v7115_v13 }
 0x869   :  { %v2922_v2 = vpop.f32.mrf.mxu0 }
 0x86a   :  { %v2923_v59 = vadd.f32 %v2922_v2, %v7115_v13  ;;  %v2932_v35 = vadd.f32 %v2928_v16, %v2765_v52 }
 0x86c   :  { %v2936_v17 = vsel %vm93_vm0, %v2932_v35, 0.0  ;;  %v2931_v18 = vadd.f32 %v2923_v59, %v2764_v51 }
 0x86d   :  { %2937 = vadd.xlane.f32.xlu0 %v2936_v17 }
 0x86e   :  { %v2933_v19 = vsel %vm93_vm0, %v2931_v18, 0.0 }
 0x86f   :  { %2934 = vadd.xlane.f32.xlu1 %v2933_v19 }
 0x8f6   :  { %v2938_v20 = vpop.xlane.xlu0 %2937 }
 0x8f7   :  { %v2940_v12 = vmul.f32 0.03125, %v2938_v20 }
 0x8f8   :  { %v2935_v3 = vpop.xlane.xlu1 %2934 }
 0x8f9   :  { %v2942_v24 = vsub.f32 %v2932_v35, %v2940_v12  ;;  %v2939_v21 = vmul.f32 0.03125, %v2935_v3 }
 0x8fb   :  { %v2941_v63 = vsub.f32 %v2931_v18, %v2939_v21  ;;  %v2944_v22 = vmul.f32 %v2942_v24, %v2942_v24 }
 0x8fd   :  { %v2948_v25 = vsel %vm93_vm0, %v2944_v22, 0.0  ;;  %v2943_v27 = vmul.f32 %v2941_v63, %v2941_v63 }
 0x8fe   :  { %2949 = vadd.xlane.f32.xlu0 %v2948_v25 }
 0x8ff   :  { %v2945_v28 = vsel %vm93_vm0, %v2943_v27, 0.0 }
 0x900   :  { %2946 = vadd.xlane.f32.xlu1 %v2945_v28 }
 0x987   :  { %v2950_v29 = vpop.xlane.xlu0 %2949 }
 0x988   :  { %v2952_v53 = vmul.f32 0.03125, %v2950_v29 }
 0x989   :  { %v2947_v30 = vpop.xlane.xlu1 %2946 }
 0x98a   :  { %v2954_v31 = vadd.f32 1e-05, %v2952_v53  ;;  %v2951_v33 = vmul.f32 0.03125, %v2947_v30 }
 0x98c   :  { %6399 = vrsqrt.f32 %v2954_v31  ;;  %v2953_v34 = vadd.f32 1e-05, %v2951_v33 }
 0x98e   :  { %6401 = vrsqrt.f32 %v2953_v34 }
 0x999   :  { %v6400_v48 = vpop.eup %6399 }
 0x99a   :  { %v2958_v8 = vmul.f32 %v6400_v48, %v2942_v24 }
 0x99b   :  { %v6402_v23 = vpop.eup %6401 }
 0x99c   :  { %v2957_v41 = vmul.f32 %v6402_v23, %v2941_v63  ;;  %v2960_v44 = vmul.f32 %v2958_v8, %v7125_v50 }
 0x99e   :  { %v2959_v47 = vmul.f32 %v2957_v41, %v7125_v50  ;;  %v7137_v51 = vadd.f32 %v2960_v44, %v7129_v43 }
 0x9a0   :  { %v7134_v49 = vadd.f32 %v2959_v47, %v7129_v43 }
 0x9a2   :  { %6218 = vmatprep.mubr.msk.f32.mxu1 %vm93_vm0, %v7134_v49 }
 0x9a3   :  { %6219 = vmatmul.mubr.msk.f32.vlgmr.msra.gmra.mxu1 %vm93_vm0, %v7137_v51 }
 0x9a4   :  { %6223 = vmatprep.mubr.msk.f32.mxu1 %vm6522_vm1, %v6520_v15 }
 0xa63   :  { %v6220_v7 = vpop.f32.mrf.mxu1 }
 0xa64   :  { %v7146_v56 = vadd.f32 %v6220_v7, %v6592_v10 }
 0xa65   :  { %v3035_v45 = vpop.f32.mrf.mxu1 }
 0xa66   :  { %v3036_v52 = vadd.f32 %v3035_v45, %v6592_v10  ;;  %3066 = vrot.lane.b32.xlu1 %v7146_v56, %s6513_s13 }
 0xa68   :  { %3070 = vrot.lane.b32.xlu0 %v3036_v52, %s6515_s15 }
 0xa6a   :  { %3064 = vrot.lane.b32.xlu1 %v3036_v52, %s6513_s13 }
 0xa6c   :  { %3046 = vrot.lane.b32.xlu0 %v3036_v52, %s6517_s17 }
 0xa6e   :  { %3076 = vrot.lane.b32.xlu1 %v3036_v52, %s6514_s14 }
 0xa70   :  { %3058 = vrot.lane.b32.xlu0 %v3036_v52, %s6519_s19 }
 0xa72   :  { %3082 = vrot.lane.b32.xlu1 %v3036_v52, %s6516_s16 }
 0xa74   :  { %3072 = vrot.lane.b32.xlu0 %v7146_v56, %s6515_s15 }
 0xa76   :  { %3052 = vrot.lane.b32.xlu1 %v3036_v52, %s6518_s18 }
 0xa78   :  { %3084 = vrot.lane.b32.xlu0 %v7146_v56, %s6516_s16 }
 0xa7a   :  { %3078 = vrot.lane.b32.xlu1 %v7146_v56, %s6514_s14 }
 0xa7c   :  { %3054 = vrot.lane.b32.xlu0 %v7146_v56, %s6518_s18 }
 0xa7e   :  { %3048 = vrot.lane.b32.xlu1 %v7146_v56, %s6517_s17 }
 0xa80   :  { %3094 = vrot.lane.b32.xlu0 %v3036_v52, %s6523_s21 }
 0xa82   :  { %3060 = vrot.lane.b32.xlu1 %v7146_v56, %s6519_s19 }
 0xa86   :  { %3088 = vrot.lane.b32.xlu1 %v3036_v52, %s6521_s20 }
 0xa8a   :  { %3100 = vrot.lane.b32.xlu1 %v3036_v52, %s6524_s22 }
 0xa8e   :  { %3106 = vrot.lane.b32.xlu1 %v3036_v52, %s6525_s23 }
 0xad8   :  { %v7174_v10 = vpop.permute.xlu1 %3066 }
 0xada   :  { %v3071_v57 = vpop.permute.xlu0 %3070 }
 0xadc   :  { %v3065_v46 = vpop.permute.xlu1 %3064 }
 0xade   :  { %v3047_v36 = vpop.permute.xlu0 %3046 }
 0xae0   :  { %v3077_v37 = vpop.permute.xlu1 %3076 }
 0xae1   :  { %v3144_v58 = vcombine.low %v3065_v46, %v3077_v37  ;;  %v3145_v60 = vcombine.high %v3065_v46, %v3077_v37 }
 0xae2   :  { %v3059_v38 = vpop.permute.xlu0 %3058 }
 0xae3   :  { %v3128_v5 = vcombine.low %v3047_v36, %v3059_v38  ;;  %v3129_v6 = vcombine.high %v3047_v36, %v3059_v38  ;;  %v3152_v9 = vrot.slane %v3144_v58, %v6645_v26  ;;  %v3159_v11 = vrot.slane %v3145_v60, %v6645_v26 }
 0xae4   :  { %v3083_v61 = vpop.permute.xlu1 %3082 }
 0xae5   :  { %v3160_v55 = vcombine.low %v3071_v57, %v3083_v61  ;;  %v3161_v4 = vcombine.high %v3071_v57, %v3083_v61  ;;  %v3136_v19 = vrot.slane %v3128_v5, %v6645_v26  ;;  %v3143_v20 = vrot.slane %v3129_v6, %v6645_v26 }
 0xae6   :  { %v3073_v0 = vpop.permute.xlu0 %3072 }
 0xae7   :  { %v3168_v14 = vrot.slane %v3160_v55, %v6645_v26  ;;  %v3175_v16 = vrot.slane %v3161_v4, %v6645_v26 }
 0xae8   :  { %v3053_v2 = vpop.permute.xlu1 %3052 }
 0xae9   :  { %v3208_v59 = vcombine.low %v3152_v9, %v3168_v14  ;;  %v3209_v35 = vcombine.high %v3152_v9, %v3168_v14  ;;  %v3224_v17 = vcombine.low %v3159_v11, %v3175_v16  ;;  %v3225_v18 = vcombine.high %v3159_v11, %v3175_v16 }
 0xaea   :  { %v3112_v12 = vcombine.low %v3036_v52, %v3053_v2  ;;  %v3113_v3 = vcombine.high %v3036_v52, %v3053_v2  ;;  %v3085_v24 = vpop.permute.xlu0 %3084 }
 0xaeb   :  { %v3216_v21 = vrot.slane %v3208_v59, %v6648_v32  ;;  %v3223_v63 = vrot.slane %v3209_v35, %v6648_v32  ;;  %v3232_v22 = vrot.slane %v3224_v17, %v6648_v32  ;;  %v3239_v25 = vrot.slane %v3225_v18, %v6648_v32 }
 0xaec   :  { %v3120_v27 = vrot.slane %v3112_v12, %v6645_v26  ;;  %v3127_v28 = vrot.slane %v3113_v3, %v6645_v26  ;;  %v3364_v29 = vcombine.low %v3073_v0, %v3085_v24  ;;  %v3365_v53 = vcombine.high %v3073_v0, %v3085_v24  ;;  %v3079_v30 = vpop.permute.xlu1 %3078 }
 0xaed   :  { %v5905_v31 = vcombine.low %v3216_v21, %v3223_v63  ;;  %v5907_v33 = vcombine.high %v3216_v21, %v3223_v63  ;;  %v5909_v34 = vcombine.low %v3232_v22, %v3239_v25  ;;  %v5911_v1 = vcombine.high %v3232_v22, %v3239_v25 }
 0xaee   :  { %v3176_v48 = vcombine.low %v3120_v27, %v3136_v19  ;;  %v3177_v54 = vcombine.high %v3120_v27, %v3136_v19  ;;  %v3192_v8 = vcombine.low %v3127_v28, %v3143_v20  ;;  %v3193_v23 = vcombine.high %v3127_v28, %v3143_v20  ;;  %v3055_v5 = vpop.permute.xlu0 %3054 }
 0xaef   :  { %v7189_v41 = vrot.slane %v5905_v31, %v6645_v26  ;;  %v7192_v44 = vrot.slane %v5907_v33, %v6645_v26  ;;  %v7195_v47 = vrot.slane %v5909_v34, %v6645_v26  ;;  %v7198_v7 = vrot.slane %v5911_v1, %v6645_v26 }
 0xaf0   :  { %v3184_v45 = vrot.slane %v3176_v48, %v6648_v32  ;;  %v3191_v52 = vrot.slane %v3177_v54, %v6648_v32  ;;  %v3200_v57 = vrot.slane %v3192_v8, %v6648_v32  ;;  %v3207_v46 = vrot.slane %v3193_v23, %v6648_v32  ;;  %v3049_v36 = vpop.permute.xlu1 %3048 }
 0xaf1   :  { %v3600_v37 = vcombine.low %v7189_v41, %v7192_v44  ;;  %v3601_v38 = vcombine.high %v7189_v41, %v7192_v44  ;;  %v3632_v58 = vcombine.low %v7195_v47, %v7198_v7  ;;  %v3372_v6 = vrot.slane %v3364_v29, %v6645_v26 }
 0xaf2   :  { %v5904_v60 = vcombine.low %v3184_v45, %v3191_v52  ;;  %v5906_v61 = vcombine.high %v3184_v45, %v3191_v52  ;;  %v5908_v55 = vcombine.low %v3200_v57, %v3207_v46  ;;  %v5910_v4 = vcombine.high %v3200_v57, %v3207_v46 }
 0xaf3   :  { %v3379_v0 = vrot.slane %v3365_v53, %v6645_v26  ;;  %v3348_v9 = vcombine.low %v7174_v10, %v3079_v30  ;;  %v3349_v11 = vcombine.high %v7174_v10, %v3079_v30  ;;  %v3316_v19 = vcombine.low %v7146_v56, %v3055_v5 }
 0xaf4   :  { %v7215_v14 = vrot.slane %v5904_v60, %v6645_v26  ;;  %v7218_v16 = vrot.slane %v5906_v61, %v6645_v26  ;;  %v7221_v2 = vrot.slane %v5908_v55, %v6645_v26  ;;  %v7224_v59 = vrot.slane %v5910_v4, %v6645_v26  ;;  %v3061_v35 = vpop.permute.xlu1 %3060 }
 0xaf5   :  { %v3356_v17 = vrot.slane %v3348_v9, %v6645_v26  ;;  %v3363_v18 = vrot.slane %v3349_v11, %v6645_v26  ;;  %v3317_v10 = vcombine.high %v7146_v56, %v3055_v5  ;;  %v3633_v20 = vcombine.high %v7195_v47, %v7198_v7 }
 0xaf6   :  { %v3584_v12 = vcombine.low %v7215_v14, %v7218_v16  ;;  %v3585_v3 = vcombine.high %v7215_v14, %v7218_v16  ;;  %v3616_v24 = vcombine.low %v7221_v2, %v7224_v59  ;;  %v3324_v27 = vrot.slane %v3316_v19, %v6645_v26 }
 0xaf7   :  { %v3412_v21 = vcombine.low %v3356_v17, %v3372_v6  ;;  %v3413_v63 = vcombine.high %v3356_v17, %v3372_v6  ;;  %v3428_v22 = vcombine.low %v3363_v18, %v3379_v0  ;;  %v3429_v25 = vcombine.high %v3363_v18, %v3379_v0 }
 0xaf8   :  { %v3331_v28 = vrot.slane %v3317_v10, %v6645_v26  ;;  %v3332_v29 = vcombine.low %v3049_v36, %v3061_v35  ;;  %v3333_v53 = vcombine.high %v3049_v36, %v3061_v35  ;;  %v7240_v30 = vpop.permute.xlu1 %3088  ;;  %v7249_v8 = vrot.slane %v3600_v37, %v6648_v32 }
 0xaf9   :  { %v3420_v31 = vrot.slane %v3412_v21, %v6648_v32  ;;  %v3427_v33 = vrot.slane %v3413_v63, %v6648_v32  ;;  %v3436_v34 = vrot.slane %v3428_v22, %v6648_v32  ;;  %v3443_v1 = vrot.slane %v3429_v25, %v6648_v32 }
 0xafa   :  { %v3340_v48 = vrot.slane %v3332_v29, %v6645_v26  ;;  %v3347_v54 = vrot.slane %v3333_v53, %v6645_v26  ;;  %v3640_v23 = vrot.slane %v3632_v58, %v6648_v32  ;;  %v3617_v11 = vcombine.high %v7221_v2, %v7224_v59 }
 0xafb   :  { %v5915_v47 = vcombine.low %v3420_v31, %v3427_v33  ;;  %v5917_v7 = vcombine.high %v3420_v31, %v3427_v33  ;;  %v5919_v45 = vcombine.low %v3436_v34, %v3443_v1  ;;  %v5921_v52 = vcombine.high %v3436_v34, %v3443_v1 }
 0xafc   :  { %v3380_v57 = vcombine.low %v3324_v27, %v3340_v48  ;;  %v3381_v46 = vcombine.high %v3324_v27, %v3340_v48  ;;  %v3396_v36 = vcombine.low %v3331_v28, %v3347_v54  ;;  %v3397_v60 = vcombine.high %v3331_v28, %v3347_v54  ;;  %v3101_v9 = vpop.permute.xlu1 %3100  ;;  %v3095_v48 = vpop.permute.xlu0 %3094 }
 0xafd   :  { %v7253_v61 = vrot.slane %v5915_v47, %v6645_v26  ;;  %v7256_v55 = vrot.slane %v5917_v7, %v6645_v26  ;;  %v7259_v4 = vrot.slane %v5919_v45, %v6645_v26  ;;  %v7262_v37 = vrot.slane %v5921_v52, %v6645_v26 }
 0xafe   :  { %v3388_v58 = vrot.slane %v3380_v57, %v6648_v32  ;;  %v3395_v5 = vrot.slane %v3381_v46, %v6648_v32  ;;  %v3404_v6 = vrot.slane %v3396_v36, %v6648_v32  ;;  %v3411_v0 = vrot.slane %v3397_v60, %v6648_v32 }
 0xaff   :  { %v3804_v14 = vcombine.low %v7253_v61, %v7256_v55  ;;  %v3805_v16 = vcombine.high %v7253_v61, %v7256_v55  ;;  %v3836_v35 = vcombine.low %v7259_v4, %v7262_v37  ;;  %v3652_v21 = vcombine.low %v7249_v8, %v3640_v23 }
 0xb00   :  { %v5914_v17 = vcombine.low %v3388_v58, %v3395_v5  ;;  %v5916_v18 = vcombine.high %v3388_v58, %v3395_v5  ;;  %v5918_v19 = vcombine.low %v3404_v6, %v3411_v0  ;;  %v5920_v10 = vcombine.high %v3404_v6, %v3411_v0  ;;  %v3107_v33 = vpop.permute.xlu1 %3106 }
 0xb01   :  { %v3615_v2 = vrot.slane %v3601_v38, %v6648_v32  ;;  %v3647_v59 = vrot.slane %v3633_v20, %v6648_v32  ;;  %v3592_v63 = vrot.slane %v3584_v12, %v6648_v32  ;;  %v3837_v41 = vcombine.high %v7259_v4, %v7262_v37  ;;  %6222 = vmatpush3.xpose.msk.msra.mxu1 %vm1059_vm2, %v3652_v21 }
 0xb02   :  { %v7284_v22 = vrot.slane %v5914_v17, %v6645_v26  ;;  %v7287_v25 = vrot.slane %v5916_v18, %v6645_v26  ;;  %v7290_v27 = vrot.slane %v5918_v19, %v6645_v26  ;;  %v7293_v28 = vrot.slane %v5920_v10, %v6645_v26  ;;  %6226 = vmatprep.subr.mxu1 %v6520_v15 }
 0xb03   :  { %v3654_v44 = vcombine.low %v3615_v2, %v3647_v59  ;;  %v3624_v38 = vrot.slane %v3616_v24, %v6648_v32  ;;  %v3599_v20 = vrot.slane %v3585_v3, %v6648_v32  ;;  %v3653_v31 = vcombine.high %v7249_v8, %v3640_v23 }
 0xb04   :  { %v3788_v12 = vcombine.low %v7284_v22, %v7287_v25  ;;  %v3789_v29 = vcombine.high %v7284_v22, %v7287_v25  ;;  %v3820_v53 = vcombine.low %v7290_v27, %v7293_v28  ;;  %v3631_v24 = vrot.slane %v3617_v11, %v6648_v32 }
 0xb05   :  { %6232 = vmatpush3.xpose.msk.msra.mxu0 %vm1059_vm2, %v3654_v44  ;;  %v3648_v34 = vcombine.low %v3592_v63, %v3624_v38  ;;  %v3248_v3 = vcombine.low %v7240_v30, %v3101_v9  ;;  %v3249_v1 = vcombine.high %v7240_v30, %v3101_v9  ;;  %v3821_v54 = vcombine.high %v7290_v27, %v7293_v28 }
 0xb06   :  { %6241 = vmatprep.subr.mxu0 %v6520_v15  ;;  %v3649_v47 = vcombine.high %v3592_v63, %v3624_v38  ;;  %v3812_v7 = vrot.slane %v3804_v14, %v6648_v32  ;;  %v3844_v8 = vrot.slane %v3836_v35, %v6648_v32  ;;  %v3650_v23 = vcombine.low %v3599_v20, %v3631_v24 }
 0xb07   :  { %6224 = vmatmul.mubr.msk.f32.vlgmr.msra.gmra.mxu1 %vm1059_vm2, %v3648_v34  ;;  %v3256_v45 = vrot.slane %v3248_v3, %v6645_v26  ;;  %v3655_v52 = vcombine.high %v3615_v2, %v3647_v59  ;;  %v3264_v57 = vcombine.low %v3095_v48, %v3107_v33  ;;  %v3263_v30 = vrot.slane %v3249_v1, %v6645_v26 }
 0xb08   :  { %6227 = vmatpush3.xpose.msk.msra.mxu1 %vm1059_vm2, %v3653_v31  ;;  %6228 = vmatprep.mubr.msk.f32.mxu1 %vm6522_vm1, %v6520_v15  ;;  %v3856_v46 = vcombine.low %v3812_v7, %v3844_v8  ;;  %v3265_v36 = vcombine.high %v3095_v48, %v3107_v33  ;;  %v3651_v61 = vcombine.high %v3599_v20, %v3631_v24 }
 0xb09   :  { %6234 = vmatmul.mubr.msk.f32.vlgmr.msra.gmra.mxu0 %vm1059_vm2, %v3650_v23  ;;  %6236 = vmatprep.subr.mxu1 %v6520_v15  ;;  %v3272_v60 = vrot.slane %v3264_v57, %v6645_v26  ;;  %v3796_v55 = vrot.slane %v3788_v12, %v6648_v32  ;;  %v3828_v37 = vrot.slane %v3820_v53, %v6648_v32 }
 0xb0a   :  { %6242 = vmatpush3.xpose.msk.msra.mxu0 %vm1059_vm2, %v3856_v46  ;;  %v3279_v4 = vrot.slane %v3265_v36, %v6645_v26  ;;  %6243 = vmatprep.mubr.msk.f32.mxu0 %vm6522_vm1, %v6520_v15  ;;  %v3819_v58 = vrot.slane %v3805_v16, %v6648_v32  ;;  %v3851_v0 = vrot.slane %v3837_v41, %v6648_v32 }
 0xb0b   :  { %6229 = vmatmul.mubr.msk.f32.vlgmr.msra.gmra.mxu1 %vm1059_vm2, %v3649_v47  ;;  %v3280_v5 = vcombine.low %v3256_v45, %v3272_v60  ;;  %v3281_v6 = vcombine.high %v3256_v45, %v3272_v60  ;;  %6251 = vmatprep.subr.mxu0 %v6520_v15  ;;  %v3852_v14 = vcombine.low %v3796_v55, %v3828_v37 }
 0xb0c   :  { %6237 = vmatpush3.xpose.msk.msra.mxu1 %vm1059_vm2, %v3655_v52  ;;  %v3296_v9 = vcombine.low %v3263_v30, %v3279_v4  ;;  %v3297_v11 = vcombine.high %v3263_v30, %v3279_v4  ;;  %6238 = vmatprep.mubr.msk.f32.mxu1 %vm6522_vm1, %v6520_v15  ;;  %v3857_v17 = vcombine.high %v3812_v7, %v3844_v8 }
 0xb0d   :  { %v3288_v35 = vrot.slane %v3280_v5, %v6648_v32  ;;  %v3295_v16 = vrot.slane %v3281_v6, %v6648_v32  ;;  %6246 = vmatprep.subr.mxu1 %v6520_v15  ;;  %v3858_v18 = vcombine.low %v3819_v58, %v3851_v0  ;;  %6244 = vmatmul.mubr.msk.f32.vlgmr.msra.gmra.mxu0 %vm1059_vm2, %v3852_v14 }
 0xb0e   :  { %v3304_v19 = vrot.slane %v3296_v9, %v6648_v32  ;;  %v3311_v10 = vrot.slane %v3297_v11, %v6648_v32  ;;  %v3853_v21 = vcombine.high %v3796_v55, %v3828_v37  ;;  %v3803_v2 = vrot.slane %v3789_v29, %v6648_v32  ;;  %6253 = vmatprep.mubr.msk.f32.mxu0 %vm6522_vm1, %v6520_v15 }
 0xb0f   :  { %v3656_v59 = vcombine.low %v3288_v35, %v3295_v16  ;;  %v5912_v63 = vcombine.high %v3288_v35, %v3295_v16  ;;  %6239 = vmatmul.mubr.msk.f32.vlgmr.msra.gmra.mxu1 %vm1059_vm2, %v3651_v61  ;;  %6252 = vmatpush3.xpose.msk.msra.mxu0 %vm1059_vm2, %v3858_v18  ;;  %v3835_v22 = vrot.slane %v3821_v54, %v6648_v32 }
 0xb10   :  { %v3672_v25 = vcombine.low %v3304_v19, %v3311_v10  ;;  %v5913_v27 = vcombine.high %v3304_v19, %v3311_v10  ;;  %6247 = vmatpush3.xpose.msk.msra.mxu1 %vm1059_vm2, %v3857_v17  ;;  %6248 = vmatprep.mubr.msk.f32.mxu1 %vm6522_vm1, %v6520_v15  ;;  %v3859_v12 = vcombine.high %v3819_v58, %v3851_v0 }
 0xb11   :  { %v3663_v28 = vrot.slane %v3656_v59, %v6645_v26  ;;  %v3671_v41 = vrot.slane %v5912_v63, %v6645_v26  ;;  %6256 = vmatprep.subr.mxu1 %v6520_v15  ;;  %v3854_v44 = vcombine.low %v3803_v2, %v3835_v22  ;;  %6261 = vmatprep.subr.mxu0 %v6520_v15 }
 0xb12   :  { %v3679_v38 = vrot.slane %v3672_v25, %v6645_v26  ;;  %v3687_v20 = vrot.slane %v5913_v27, %v6645_v26  ;;  %v3855_v34 = vcombine.high %v3803_v2, %v3835_v22 }
 0xb13   :  { %6249 = vmatmul.mubr.msk.f32.vlgmr.msra.gmra.mxu1 %vm1059_vm2, %v3853_v21  ;;  %6254 = vmatmul.mubr.msk.f32.vlgmr.msra.gmra.mxu0 %vm1059_vm2, %v3854_v44  ;;  %v3688_v29 = vcombine.low %v3663_v28, %v3671_v41  ;;  %v3689_v53 = vcombine.high %v3663_v28, %v3671_v41 }
 0xb14   :  { %6257 = vmatpush3.xpose.msk.msra.mxu1 %vm1059_vm2, %v3859_v12  ;;  %6258 = vmatprep.mubr.msk.f32.mxu1 %vm6522_vm1, %v6520_v15  ;;  %v3704_v31 = vcombine.low %v3679_v38, %v3687_v20  ;;  %v3705_v33 = vcombine.high %v3679_v38, %v3687_v20 }
 0xb15   :  { %6266 = vmatprep.subr.mxu1 %v6520_v15  ;;  %v3696_v24 = vrot.slane %v3688_v29, %v6648_v32  ;;  %6263 = vmatprep.mubr.msk.f32.mxu0 %vm6522_vm1, %v6520_v15  ;;  %v7370_v3 = vrot.slane %v3689_v53, %v6648_v32 }
 0xb16   :  { %v3712_v1 = vrot.slane %v3704_v31, %v6648_v32  ;;  %v7374_v48 = vrot.slane %v3705_v33, %v6648_v32 }
 0xb17   :  { %6259 = vmatmul.mubr.msk.f32.vlgmr.msra.gmra.mxu1 %vm1059_vm2, %v3855_v34 }
 0xb18   :  { %v3720_v54 = vcombine.low %v3696_v24, %v3712_v1  ;;  %v3721_v47 = vcombine.high %v3696_v24, %v3712_v1  ;;  %v3722_v7 = vcombine.low %v7370_v3, %v7374_v48  ;;  %6268 = vmatprep.mubr.msk.f32.mxu1 %vm6522_vm1, %v6520_v15  ;;  %v3723_v8 = vcombine.high %v7370_v3, %v7374_v48 }
 0xb1a   :  { %6262 = vmatpush3.msra.mxu0 %v3720_v54  ;;  %6267 = vmatpush3.msra.mxu1 %v3721_v47 }
 0xb1b   :  { %6271 = vmatprep.subr.mxu0 %v6520_v15  ;;  %6276 = vmatprep.subr.mxu1 %v6520_v15 }
 0xbc7   :  { %v4000_v23 = vpop.f32.mrf.mxu1 }
 0xbc8   :  { %v4536_v45 = vmul.f32 0.35355338, %v4000_v23 }
 0xbc9   :  { %v4152_v52 = vpop.f32.mrf.mxu0  ;;  %v6225_v57 = vpop.f32.mrf.mxu1 }
 0xbca   :  { %v4538_v30 = vmul.f32 0.35355338, %v4152_v52  ;;  %v4544_v46 = vsel %vm1059_vm2, %v4536_v45, -inf }
 0xbcb   :  { %v6235_v36 = vpop.f32.mrf.mxu0  ;;  %4545 = vmax.xlane.f32.xlu0 %v4544_v46  ;;  %v4076_v60 = vpop.f32.mrf.mxu1 }
 0xbcc   :  { %v4537_v61 = vmul.f32 0.35355338, %v4076_v60  ;;  %v4550_v4 = vsel %vm1059_vm2, %v4538_v30, -inf }
 0xbcd   :  { %v6230_v55 = vpop.f32.mrf.mxu1  ;;  %v4304_v58 = vpop.f32.mrf.mxu0 }
 0xbce   :  { %v4547_v37 = vsel %vm1059_vm2, %v4537_v61, -inf  ;;  %v4540_v6 = vmul.f32 0.35355338, %v4304_v58 }
 0xbcf   :  { %4551 = vmax.xlane.f32.xlu0 %v4550_v4  ;;  %4548 = vmax.xlane.f32.xlu1 %v4547_v37  ;;  %v4228_v5 = vpop.f32.mrf.mxu1  ;;  %v6245_v9 = vpop.f32.mrf.mxu0 }
 0xbd0   :  { %v4539_v0 = vmul.f32 0.35355338, %v4228_v5  ;;  %v4556_v14 = vsel %vm1059_vm2, %v4540_v6, -inf }
 0xbd1   :  { %v6240_v11 = vpop.f32.mrf.mxu1 }
 0xbd2   :  { %v4553_v35 = vsel %vm1059_vm2, %v4539_v0, -inf }
 0xbd3   :  { %4554 = vmax.xlane.f32.xlu0 %v4553_v35  ;;  %v4380_v16 = vpop.f32.mrf.mxu1  ;;  %4557 = vmax.xlane.f32.xlu1 %v4556_v14  ;;  %v4456_v17 = vpop.f32.mrf.mxu0 }
 0xbd4   :  { %v4541_v18 = vmul.f32 0.35355338, %v4380_v16  ;;  %v4542_v19 = vmul.f32 0.35355338, %v4456_v17 }
 0xbd5   :  { %v6250_v10 = vpop.f32.mrf.mxu1  ;;  %v6255_v21 = vpop.f32.mrf.mxu0 }
 0xbd6   :  { %v4559_v2 = vsel %vm1059_vm2, %v4541_v18, -inf  ;;  %v4562_v59 = vsel %vm1059_vm2, %v4542_v19, -inf }
 0xbd7   :  { %4560 = vmax.xlane.f32.xlu0 %v4559_v2  ;;  %v4532_v63 = vpop.f32.mrf.mxu1  ;;  %4563 = vmax.xlane.f32.xlu1 %v4562_v59 }
 0xbd8   :  { %v4543_v22 = vmul.f32 0.35355338, %v4532_v63 }
 0xbd9   :  { %v6260_v25 = vpop.f32.mrf.mxu1 }
 0xbda   :  { %v4565_v27 = vsel %vm1059_vm2, %v4543_v22, -inf }
 0xbdb   :  { %4566 = vmax.xlane.f32.xlu0 %v4565_v27 }
 0xbe8   :  { %3096 = vrot.lane.b32.xlu1 %v7146_v56, %s6523_s21 }
 0xbf1   :  { %3090 = vrot.lane.b32.xlu0 %v7146_v56, %s6521_s20 }
 0xc54   :  { %v4546_v28 = vpop.xlane.xlu0 %4545 }
 0xc55   :  { %v4568_v41 = vsub.f32 %v4536_v45, %v4546_v28 }
 0xc57   :  { %v4576_v44 = vmul.f32 1.442695, %v4568_v41 }
 0xc58   :  { %v4552_v38 = vpop.xlane.xlu0 %4551  ;;  %v4549_v20 = vpop.xlane.xlu1 %4548 }
 0xc59   :  { %6403 = vpow2.f32 %v4576_v44  ;;  %v4570_v12 = vsub.f32 %v4538_v30, %v4552_v38  ;;  %v4569_v29 = vsub.f32 %v4537_v61, %v4549_v20 }
 0xc5b   :  { %v4580_v53 = vmul.f32 1.442695, %v4570_v12  ;;  %v4578_v31 = vmul.f32 1.442695, %v4569_v29 }
 0xc5c   :  { %v4555_v33 = vpop.xlane.xlu0 %4554  ;;  %v4558_v34 = vpop.xlane.xlu1 %4557 }
 0xc5d   :  { %6405 = vpow2.f32 %v4580_v53  ;;  %v4571_v24 = vsub.f32 %v4539_v0, %v4555_v33  ;;  %v4572_v1 = vsub.f32 %v4540_v6, %v4558_v34 }
 0xc5e   :  { %6407 = vpow2.f32 %v4578_v31 }
 0xc5f   :  { %v4582_v54 = vmul.f32 1.442695, %v4571_v24  ;;  %v4584_v47 = vmul.f32 1.442695, %v4572_v1 }
 0xc60   :  { %v4561_v23 = vpop.xlane.xlu0 %4560  ;;  %v4564_v52 = vpop.xlane.xlu1 %4563 }
 0xc61   :  { %6409 = vpow2.f32 %v4582_v54  ;;  %v4573_v45 = vsub.f32 %v4541_v18, %v4561_v23  ;;  %v4574_v57 = vsub.f32 %v4542_v19, %v4564_v52 }
 0xc62   :  { %6411 = vpow2.f32 %v4584_v47 }
 0xc63   :  { %v4588_v46 = vmul.f32 1.442695, %v4574_v57  ;;  %v4586_v36 = vmul.f32 1.442695, %v4573_v45 }
 0xc64   :  { %v4567_v30 = vpop.xlane.xlu0 %4566  ;;  %v3097_v21 = vpop.permute.xlu1 %3096 }
 0xc65   :  { %v4575_v60 = vsub.f32 %v4543_v22, %v4567_v30  ;;  %6413 = vpow2.f32 %v4588_v46 }
 0xc66   :  { %v6404_v61 = vpop.eup %6403  ;;  %6415 = vpow2.f32 %v4586_v36 }
 0xc67   :  { %v4590_v55 = vmul.f32 1.442695, %v4575_v60  ;;  %v4592_v4 = vsel %vm1059_vm2, %v6404_v61, 0.0 }
 0xc68   :  { %4593 = vadd.xlane.f32.xlu1 %v4592_v4  ;;  %v3091_v59 = vpop.permute.xlu0 %3090 }
 0xc69   :  { %6417 = vpow2.f32 %v4590_v55 }
 0xc6a   :  { %v6406_v37 = vpop.eup %6405 }
 0xc6b   :  { %v6408_v58 = vpop.eup %6407  ;;  %v4598_v5 = vsel %vm1059_vm2, %v6406_v37, 0.0 }
 0xc6c   :  { %4599 = vadd.xlane.f32.xlu1 %v4598_v5  ;;  %v4595_v6 = vsel %vm1059_vm2, %v6408_v58, 0.0 }
 0xc6d   :  { %4596 = vadd.xlane.f32.xlu0 %v4595_v6 }
 0xc6e   :  { %v6410_v0 = vpop.eup %6409 }
 0xc6f   :  { %v7400_v9 = vpop.eup %6411  ;;  %v4601_v11 = vsel %vm1059_vm2, %v6410_v0, 0.0 }
 0xc70   :  { %v4604_v14 = vsel %vm1059_vm2, %v7400_v9, 0.0 }
 0xc71   :  { %4602 = vadd.xlane.f32.xlu0 %v4601_v11  ;;  %4605 = vadd.xlane.f32.xlu1 %v4604_v14 }
 0xc72   :  { %v7405_v35 = vpop.eup %6413 }
 0xc73   :  { %v4610_v16 = vsel %vm1059_vm2, %v7405_v35, 0.0  ;;  %v7409_v17 = vpop.eup %6415 }
 0xc74   :  { %v4607_v10 = vsel %vm1059_vm2, %v7409_v17, 0.0 }
 0xc75   :  { %4611 = vadd.xlane.f32.xlu0 %v4610_v16 }
 0xc76   :  { %v7411_v18 = vpop.eup %6417 }
 0xc77   :  { %v4613_v19 = vsel %vm1059_vm2, %v7411_v18, 0.0 }
 0xc78   :  { %4614 = vadd.xlane.f32.xlu1 %v4613_v19 }
 0xc79   :  { %4608 = vadd.xlane.f32.xlu0 %v4607_v10 }
 0xc89   :  { %3108 = vrot.lane.b32.xlu1 %v7146_v56, %s6525_s23 }
 0xc8f   :  { %3102 = vrot.lane.b32.xlu0 %v7146_v56, %s6524_s22 }
 0xcf1   :  { %v4594_v2 = vpop.xlane.xlu1 %4593 }
 0xcf2   :  { %6419 = vrcp.f32 %v4594_v2 }
 0xcf5   :  { %v4600_v63 = vpop.xlane.xlu1 %4599 }
 0xcf6   :  { %v4597_v22 = vpop.xlane.xlu0 %4596  ;;  %6421 = vrcp.f32 %v4600_v63 }
 0xcf7   :  { %6423 = vrcp.f32 %v4597_v22 }
 0xcfa   :  { %v4603_v25 = vpop.xlane.xlu0 %4602  ;;  %v4606_v27 = vpop.xlane.xlu1 %4605 }
 0xcfb   :  { %6425 = vrcp.f32 %v4603_v25 }
 0xcfc   :  { %6427 = vrcp.f32 %v4606_v27 }
 0xcfe   :  { %v4612_v28 = vpop.xlane.xlu0 %4611 }
 0xcff   :  { %v6420_v41 = vpop.eup %6419 }
 0xd00   :  { %v4617_v44 = vmul.f32 %v6420_v41, %v6404_v61 }
 0xd01   :  { %v4615_v38 = vpop.xlane.xlu1 %4614 }
 0xd02   :  { %6264 = vmatmul.mubr.msk.f32.vlgmr.msra.gmra.mxu0 %vm1059_vm2, %v4617_v44  ;;  %v4609_v20 = vpop.xlane.xlu0 %4608 }
 0xd03   :  { %v6422_v12 = vpop.eup %6421  ;;  %6272 = vmatpush3.msra.mxu0 %v3722_v7  ;;  %6273 = vmatprep.mubr.msk.f32.mxu0 %vm6522_vm1, %v6520_v15  ;;  %6429 = vrcp.f32 %v4609_v20 }
 0xd04   :  { %v6424_v56 = vpop.eup %6423  ;;  %v4621_v29 = vmul.f32 %v6422_v12, %v6406_v37  ;;  %6281 = vmatprep.subr.mxu0 %v6520_v15  ;;  %6431 = vrcp.f32 %v4612_v28 }
 0xd05   :  { %v3109_v53 = vpop.permute.xlu1 %3108  ;;  %v4619_v31 = vmul.f32 %v6424_v56, %v6408_v58  ;;  %6433 = vrcp.f32 %v4615_v38 }
 0xd06   :  { %v3468_v33 = vcombine.low %v3097_v21, %v3109_v53  ;;  %v3469_v34 = vcombine.high %v3097_v21, %v3109_v53  ;;  %6274 = vmatmul.mubr.msk.f32.vlgmr.msra.gmra.mxu0 %vm1059_vm2, %v4621_v29  ;;  %v3103_v24 = vpop.permute.xlu0 %3102  ;;  %v6454_v53 = vld [vmem:[%s7607_s2 + $0x8] sm:$0xff] }
 0xd07   :  { %6269 = vmatmul.mubr.msk.f32.vlgmr.msra.gmra.mxu1 %vm1059_vm2, %v4619_v31  ;;  %v3452_v1 = vcombine.low %v3091_v59, %v3103_v24  ;;  %v3453_v54 = vcombine.high %v3091_v59, %v3103_v24  ;;  %6283 = vmatprep.mubr.msk.f32.mxu0 %vm6522_vm1, %v6520_v15  ;;  %v6455_v31 = vld [vmem:[%s7608_s3 + $0x8] sm:$0xff]  ;;  %v7498_v24 = vld [vmem:[%s7609_s4 + $0x38] sm:$0xff] }
 0xd08   :  { %v6426_v7 = vpop.eup %6425  ;;  %v3476_v47 = vrot.slane %v3468_v33, %v6645_v26  ;;  %6277 = vmatpush3.msra.mxu1 %v3723_v8  ;;  %6278 = vmatprep.mubr.msk.f32.mxu1 %vm6522_vm1, %v6520_v15  ;;  %v3483_v23 = vrot.slane %v3469_v34, %v6645_v26  ;;  %v6456_v33 = vld [vmem:[%s7607_s2] sm:$0xff] }
 0xd09   :  { %v3460_v52 = vrot.slane %v3452_v1, %v6645_v26  ;;  %v3467_v45 = vrot.slane %v3453_v54, %v6645_v26  ;;  %v4623_v57 = vmul.f32 %v6426_v7, %v6410_v0  ;;  %6286 = vmatprep.subr.mxu1 %v6520_v15  ;;  %v6428_v21 = vpop.eup %6427  ;;  %v6457_v34 = vld [vmem:[%s7608_s3] sm:$0xff] }
 0xd0a   :  { %v4625_v44 = vmul.f32 %v6428_v21, %v7400_v9 }
 0xd0b   :  { %v3484_v46 = vcombine.low %v3460_v52, %v3476_v47  ;;  %v3485_v36 = vcombine.high %v3460_v52, %v3476_v47  ;;  %v3500_v30 = vcombine.low %v3467_v45, %v3483_v23  ;;  %v3501_v60 = vcombine.high %v3467_v45, %v3483_v23  ;;  %6279 = vmatmul.mubr.msk.f32.vlgmr.msra.gmra.mxu1 %vm1059_vm2, %v4623_v57 }
 0xd0c   :  { %6288 = vmatprep.mubr.msk.f32.mxu1 %vm6522_vm1, %v6520_v15 }
 0xd0d   :  { %v3492_v3 = vrot.slane %v3484_v46, %v6648_v32  ;;  %v3499_v48 = vrot.slane %v3485_v36, %v6648_v32  ;;  %v3508_v8 = vrot.slane %v3500_v30, %v6648_v32  ;;  %v3515_v61 = vrot.slane %v3501_v60, %v6648_v32 }
 0xd0f   :  { %v3860_v55 = vcombine.low %v3492_v3, %v3499_v48  ;;  %v5922_v4 = vcombine.high %v3492_v3, %v3499_v48  ;;  %v3876_v37 = vcombine.low %v3508_v8, %v3515_v61  ;;  %v5923_v58 = vcombine.high %v3508_v8, %v3515_v61 }
 0xd10   :  { %v6430_v2 = vpop.eup %6429 }
 0xd11   :  { %v3867_v5 = vrot.slane %v3860_v55, %v6645_v26  ;;  %v3875_v6 = vrot.slane %v5922_v4, %v6645_v26  ;;  %v3883_v0 = vrot.slane %v3876_v37, %v6645_v26  ;;  %v3891_v11 = vrot.slane %v5923_v58, %v6645_v26  ;;  %v6432_v27 = vpop.eup %6431 }
 0xd12   :  { %v4627_v38 = vmul.f32 %v6430_v2, %v7409_v17  ;;  %v6434_v20 = vpop.eup %6433  ;;  %v4629_v29 = vmul.f32 %v6432_v27, %v7405_v35  ;;  %v6450_v17 = vld [vmem:[%s7607_s2 + $0x18] sm:$0xff] }
 0xd13   :  { %v3892_v14 = vcombine.low %v3867_v5, %v3875_v6  ;;  %v3908_v16 = vcombine.low %v3883_v0, %v3891_v11  ;;  %v3893_v19 = vcombine.high %v3867_v5, %v3875_v6  ;;  %v3909_v10 = vcombine.high %v3883_v0, %v3891_v11  ;;  %v6451_v35 = vld [vmem:[%s7608_s3 + $0x18] sm:$0xff] }
 0xd14   :  { %v4631_v9 = vmul.f32 %v6434_v20, %v7411_v18  ;;  %v6453_v18 = vld [vmem:[%s7608_s3 + $0x10] sm:$0xff] }
 0xd15   :  { %v3900_v59 = vrot.slane %v3892_v14, %v6648_v32  ;;  %v3916_v63 = vrot.slane %v3908_v16, %v6648_v32  ;;  %v3907_v22 = vrot.slane %v3893_v19, %v6648_v32  ;;  %v3923_v25 = vrot.slane %v3909_v10, %v6648_v32 }
 0xd17   :  { %v3924_v28 = vcombine.low %v3900_v59, %v3916_v63  ;;  %v3925_v41 = vcombine.high %v3900_v59, %v3916_v63  ;;  %v3926_v12 = vcombine.low %v3907_v22, %v3923_v25  ;;  %v3927_v56 = vcombine.high %v3907_v22, %v3923_v25 }
 0xd19   :  { %6282 = vmatpush3.msra.mxu0 %v3924_v28  ;;  %6287 = vmatpush3.msra.mxu1 %v3925_v41 }
 0xd1a   :  { %6284 = vmatmul.mubr.msk.f32.vlgmr.msra.gmra.mxu0 %vm1059_vm2, %v4625_v44  ;;  %6289 = vmatmul.mubr.msk.f32.vlgmr.msra.gmra.mxu1 %vm1059_vm2, %v4627_v38 }
 0xd1b   :  { %6291 = vmatprep.subr.mxu0 %v6520_v15  ;;  %6296 = vmatprep.subr.mxu1 %v6520_v15 }
 0xd1c   :  { %6292 = vmatpush3.msra.mxu0 %v3926_v12  ;;  %6297 = vmatpush3.msra.mxu1 %v3927_v56 }
 0xd1d   :  { %6293 = vmatprep.mubr.msk.f32.mxu0 %vm6522_vm1, %v6520_v15  ;;  %6298 = vmatprep.mubr.msk.f32.mxu1 %vm6522_vm1, %v6520_v15  ;;  %v6452_v15 = vld [vmem:[%s7607_s2 + $0x10] sm:$0xff] }
 0xd1e   :  { %6294 = vmatmul.mubr.msk.f32.vlgmr.msra.gmra.mxu0 %vm1059_vm2, %v4629_v29  ;;  %6299 = vmatmul.mubr.msk.f32.vlgmr.msra.gmra.mxu1 %vm1059_vm2, %v4631_v9 }
 0xd1f   :  { %6301 = vmatprep.subr.mxu0 %v6450_v17  ;;  %6312 = vmatprep.subr.mxu1 %v6451_v35 }
 0xd20   :  { %6302 = vmatpush3.msra.mxu0 %v6450_v17  ;;  %6313 = vmatpush3.msra.mxu1 %v6451_v35 }
 0xd21   :  { %6303 = vmatprep.subr.mxu0 %v6452_v15  ;;  %6314 = vmatprep.subr.mxu1 %v6453_v18 }
 0xd22   :  { %6304 = vmatpush3.msra.mxu0 %v6452_v15  ;;  %6315 = vmatpush3.msra.mxu1 %v6453_v18 }
 0xd23   :  { %6305 = vmatprep.subr.mxu0 %v6454_v53  ;;  %6316 = vmatprep.subr.mxu1 %v6455_v31 }
 0xd24   :  { %6306 = vmatpush3.msra.mxu0 %v6454_v53  ;;  %6317 = vmatpush3.msra.mxu1 %v6455_v31 }
 0xd25   :  { %6307 = vmatprep.subr.mxu0 %v6456_v33  ;;  %6318 = vmatprep.subr.mxu1 %v6457_v34 }
 0xd26   :  { %6308 = vmatpush3.msra.mxu0 %v6456_v33  ;;  %6319 = vmatpush3.msra.mxu1 %v6457_v34 }
 0xd27   :  { %6323 = vmatprep.subr.mxu0 %v7498_v24 }
 0xdc2   :  { %v4701_v1 = vpop.f32.mrf.mxu0 }
 0xdc4   :  { %v6265_v54 = vpop.f32.mrf.mxu0 }
 0xdc6   :  { %v4847_v7 = vpop.f32.mrf.mxu0 }
 0xdc7   :  { %v4774_v47 = vpop.f32.mrf.mxu1  ;;  %v5216_v45 = vcombine.low %v4701_v1, %v4847_v7  ;;  %v5217_v57 = vcombine.high %v4701_v1, %v4847_v7 }
 0xdc8   :  { %v6275_v23 = vpop.f32.mrf.mxu0 }
 0xdc9   :  { %v6270_v52 = vpop.f32.mrf.mxu1  ;;  %v5224_v3 = vrot.slane %v5216_v45, %v6645_v26  ;;  %v5231_v48 = vrot.slane %v5217_v57, %v6645_v26 }
 0xdcb   :  { %v4920_v46 = vpop.f32.mrf.mxu1 }
 0xdcc   :  { %v5232_v36 = vcombine.low %v4774_v47, %v4920_v46  ;;  %v5233_v30 = vcombine.high %v4774_v47, %v4920_v46 }
 0xdcd   :  { %v6280_v60 = vpop.f32.mrf.mxu1 }
 0xdce   :  { %v5240_v8 = vrot.slane %v5232_v36, %v6645_v26  ;;  %v5247_v61 = vrot.slane %v5233_v30, %v6645_v26 }
 0xdd0   :  { %v5248_v55 = vcombine.low %v5224_v3, %v5240_v8  ;;  %v5249_v4 = vcombine.high %v5224_v3, %v5240_v8  ;;  %v5264_v37 = vcombine.low %v5231_v48, %v5247_v61  ;;  %v5265_v58 = vcombine.high %v5231_v48, %v5247_v61 }
 0xdd2   :  { %v5256_v5 = vrot.slane %v5248_v55, %v6648_v32  ;;  %v5263_v6 = vrot.slane %v5249_v4, %v6648_v32  ;;  %v5272_v0 = vrot.slane %v5264_v37, %v6648_v32  ;;  %v5279_v11 = vrot.slane %v5265_v58, %v6648_v32 }
 0xdd4   :  { %v5352_v14 = vcombine.low %v5256_v5, %v5263_v6  ;;  %v5948_v16 = vcombine.high %v5256_v5, %v5263_v6  ;;  %v5368_v19 = vcombine.low %v5272_v0, %v5279_v11  ;;  %v5949_v10 = vcombine.high %v5272_v0, %v5279_v11 }
 0xdd6   :  { %v5359_v21 = vrot.slane %v5352_v14, %v6645_v26  ;;  %v5367_v2 = vrot.slane %v5948_v16, %v6645_v26  ;;  %v5375_v59 = vrot.slane %v5368_v19, %v6645_v26  ;;  %v5383_v63 = vrot.slane %v5949_v10, %v6645_v26 }
 0xdd8   :  { %v5384_v22 = vcombine.low %v5359_v21, %v5367_v2  ;;  %v5400_v25 = vcombine.low %v5375_v59, %v5383_v63  ;;  %v5385_v27 = vcombine.high %v5359_v21, %v5367_v2  ;;  %v5401_v28 = vcombine.high %v5375_v59, %v5383_v63 }
 0xdda   :  { %v5392_v41 = vrot.slane %v5384_v22, %v6648_v32  ;;  %v5408_v44 = vrot.slane %v5400_v25, %v6648_v32  ;;  %v4993_v38 = vpop.f32.mrf.mxu0  ;;  %v5066_v20 = vpop.f32.mrf.mxu1  ;;  %v5399_v17 = vrot.slane %v5385_v27, %v6648_v32  ;;  %v5415_v35 = vrot.slane %v5401_v28, %v6648_v32 }
 0xddc   :  { %v5417_v12 = vcombine.high %v5392_v41, %v5408_v44  ;;  %v5416_v56 = vcombine.low %v5392_v41, %v5408_v44  ;;  %v6285_v29 = vpop.f32.mrf.mxu0  ;;  %v6290_v9 = vpop.f32.mrf.mxu1  ;;  %v5418_v1 = vcombine.low %v5399_v17, %v5415_v35  ;;  %v5419_v60 = vcombine.high %v5399_v17, %v5415_v35 }
 0xdde   :  { %5490 = vrot.lane.b32.xlu0 %v5417_v12, %s6512_s25  ;;  %v5139_v15 = vpop.f32.mrf.mxu0  ;;  %v5212_v18 = vpop.f32.mrf.mxu1 }
 0xddf   :  { %v5284_v53 = vcombine.low %v4993_v38, %v5139_v15  ;;  %v5285_v31 = vcombine.high %v4993_v38, %v5139_v15  ;;  %v5300_v33 = vcombine.low %v5066_v20, %v5212_v18  ;;  %v5301_v34 = vcombine.high %v5066_v20, %v5212_v18  ;;  %v6460_v18 = vld [vmem:[%s7609_s4 + $0x28] sm:$0xff] }
 0xde0   :  { %v6295_v54 = vpop.f32.mrf.mxu0  ;;  %v6300_v7 = vpop.f32.mrf.mxu1 }
 0xde1   :  { %v5292_v47 = vrot.slane %v5284_v53, %v6645_v26  ;;  %v5299_v23 = vrot.slane %v5285_v31, %v6645_v26  ;;  %v5308_v52 = vrot.slane %v5300_v33, %v6645_v26  ;;  %v5315_v45 = vrot.slane %v5301_v34, %v6645_v26  ;;  %v6461_v53 = vld [vmem:[%s7609_s4 + $0x20] sm:$0xff]  ;;  %v6463_v31 = vld [vmem:[%s7609_s4 + $0x10] sm:$0xff]  ;;  %v6464_v33 = vld [vmem:[%s7609_s4 + $0x8] sm:$0xff] }
 0xde2   :  { %5498 = vrot.lane.b32.xlu0 %v5418_v1, %s6528_s26  ;;  %v6465_v34 = vld [vmem:[%s7609_s4] sm:$0xff] }
 0xde3   :  { %v5316_v57 = vcombine.low %v5292_v47, %v5308_v52  ;;  %v5317_v46 = vcombine.high %v5292_v47, %v5308_v52  ;;  %v5332_v36 = vcombine.low %v5299_v23, %v5315_v45  ;;  %v5333_v30 = vcombine.high %v5299_v23, %v5315_v45 }
 0xde5   :  { %v5324_v3 = vrot.slane %v5316_v57, %v6648_v32  ;;  %v5331_v48 = vrot.slane %v5317_v46, %v6648_v32  ;;  %v5340_v8 = vrot.slane %v5332_v36, %v6648_v32  ;;  %v5347_v61 = vrot.slane %v5333_v30, %v6648_v32 }
 0xde6   :  { %5506 = vrot.lane.b32.xlu0 %v5419_v60, %s6529_s29 }
 0xde7   :  { %v5420_v55 = vcombine.low %v5324_v3, %v5331_v48  ;;  %v5950_v4 = vcombine.high %v5324_v3, %v5331_v48  ;;  %v5436_v37 = vcombine.low %v5340_v8, %v5347_v61  ;;  %v5951_v58 = vcombine.high %v5340_v8, %v5347_v61 }
 0xde9   :  { %v5427_v5 = vrot.slane %v5420_v55, %v6645_v26  ;;  %v5435_v6 = vrot.slane %v5950_v4, %v6645_v26  ;;  %v5443_v0 = vrot.slane %v5436_v37, %v6645_v26  ;;  %v5451_v11 = vrot.slane %v5951_v58, %v6645_v26 }
 0xdeb   :  { %v5452_v14 = vcombine.low %v5427_v5, %v5435_v6  ;;  %v5468_v16 = vcombine.low %v5443_v0, %v5451_v11  ;;  %v5453_v19 = vcombine.high %v5427_v5, %v5435_v6  ;;  %v5469_v10 = vcombine.high %v5443_v0, %v5451_v11 }
 0xded   :  { %v5460_v21 = vrot.slane %v5452_v14, %v6648_v32  ;;  %v5476_v2 = vrot.slane %v5468_v16, %v6648_v32  ;;  %v5467_v22 = vrot.slane %v5453_v19, %v6648_v32  ;;  %v5483_v25 = vrot.slane %v5469_v10, %v6648_v32 }
 0xdef   :  { %v5485_v59 = vcombine.high %v5460_v21, %v5476_v2  ;;  %v5484_v63 = vcombine.low %v5460_v21, %v5476_v2  ;;  %v5486_v27 = vcombine.low %v5467_v22, %v5483_v25  ;;  %v5487_v26 = vcombine.high %v5467_v22, %v5483_v25 }
 0xdf1   :  { %5492 = vrot.lane.b32.xlu1 %v5485_v59, %s6512_s25 }
 0xdf5   :  { %5500 = vrot.lane.b32.xlu1 %v5486_v27, %s6528_s26 }
 0xdf9   :  { %5508 = vrot.lane.b32.xlu1 %v5487_v26, %s6529_s29 }
 0xe50   :  { %v5491_v28 = vpop.permute.xlu0 %5490 }
 0xe51   :  { %v5512_v44 = vsel %vm1059_vm2, %v5416_v56, %v5491_v28  ;;  %v6459_v56 = vld [vmem:[%s7609_s4 + $0x30] sm:$0xff] }
 0xe54   :  { %v5499_v41 = vpop.permute.xlu0 %5498 }
 0xe55   :  { %v5514_v38 = vsel %vm2646_vm3, %v5512_v44, %v5499_v41 }
 0xe58   :  { %v5507_v20 = vpop.permute.xlu0 %5506 }
 0xe59   :  { %v5516_v12 = vsel %vm2649_vm4, %v5514_v38, %v5507_v20 }
 0xe5a   :  { %6309 = vmatprep.mubr.msk.f32.mxu0 %vm93_vm0, %v5516_v12 }
 0xe63   :  { %v5493_v32 = vpop.permute.xlu1 %5492 }
 0xe64   :  { %v5513_v9 = vsel %vm1059_vm2, %v5484_v63, %v5493_v32 }
 0xe67   :  { %v5501_v29 = vpop.permute.xlu1 %5500 }
 0xe68   :  { %v5515_v17 = vsel %vm2646_vm3, %v5513_v9, %v5501_v29 }
 0xe6b   :  { %v5509_v35 = vpop.permute.xlu1 %5508 }
 0xe6c   :  { %v5517_v15 = vsel %vm2649_vm4, %v5515_v17, %v5509_v35 }
 0xe6d   :  { %6310 = vmatmul.mubr.msk.f32.vlgmr.msra.gmra.mxu0 %vm93_vm0, %v5517_v15 }
 0xe6e   :  { %6324 = vmatpush3.msra.mxu0 %v7498_v24  ;;  %v6462_v24 = vld [vmem:[%s7609_s4 + $0x18] sm:$0xff]  ;;  %s6530_s4 = smov [#allocation5]  }
 0xe6f   :  { %6325 = vmatprep.subr.mxu0 %v6459_v56  ;;  %s5834_s18 = sshll.u32 %s6530_s4, 4  ;;  %s5835_s18 = int_to_ptr.vmem [resolvable:$true] %s5834_s18 }
 0xe70   :  { %6326 = vmatpush3.msra.mxu0 %v6459_v56  ;;  %s6486_s19 = scalar_lea.vmem %s5835_s18, 256  ;;  %p6491_p6 = scmp.lt.s32.totalorder %s5835_s18, %s5835_s18 }
 0xe71   :  { %6327 = vmatprep.subr.mxu0 %v6460_v18  ;;  %p6487_p5 = scmp.ne.s32.totalorder %s5835_s18, %s6486_s19  ;;  %p6492_p7 = scmp.lt.s32.totalorder %s6486_s19, %s6486_s19 }
 0xe72   :  { %6328 = vmatpush3.msra.mxu0 %v6460_v18 }
 0xe73   :  { %6329 = vmatprep.subr.mxu0 %v6461_v53  ;;  %p6493_p8 = por %p6492_p7, %p6491_p6 }
 0xe74   :  { %6330 = vmatpush3.msra.mxu0 %v6461_v53 }
 0xe75   :  { %6331 = vmatprep.subr.mxu0 %v6462_v24  ;;  %p6494_p9 = pnand %p6493_p8, %p6487_p5 }
 0xe76   :  { %6332 = vmatpush3.msra.mxu0 %v6462_v24 }
 0xe77   :  { %6333 = vmatprep.subr.mxu0 %v6463_v31 }
 0xe78   :  { %6334 = vmatpush3.msra.mxu0 %v6463_v31 }
 0xe79   :  { %6335 = vmatprep.subr.mxu0 %v6464_v33 }
 0xe7a   :  { %6336 = vmatpush3.msra.mxu0 %v6464_v33 }
 0xe7b   :  { %6337 = vmatprep.subr.mxu0 %v6465_v34 }
 0xe7c   :  { %6338 = vmatpush3.msra.mxu0 %v6465_v34 }
 0xf2d   :  { %v6311_v1 = vpop.f32.mrf.mxu0 }
 0xf2e   :  { %v5596_v54 = vadd.f32 %v6311_v1, %v7031_v39 }
 0xf2f   :  { %v5590_v7 = vpop.f32.mrf.mxu0 }
 0xf30   :  { %v5591_v47 = vadd.f32 %v5590_v7, %v7031_v39  ;;  %v5600_v23 = vadd.f32 %v5596_v54, %v7137_v51 }
 0xf32   :  { %v5604_v52 = vsel %vm93_vm0, %v5600_v23, 0.0  ;;  %v5599_v45 = vadd.f32 %v5591_v47, %v7134_v49 }
 0xf33   :  { %5605 = vadd.xlane.f32.xlu1 %v5604_v52 }
 0xf34   :  { %v5601_v57 = vsel %vm93_vm0, %v5599_v45, 0.0 }
 0xf35   :  { %5602 = vadd.xlane.f32.xlu0 %v5601_v57 }
 0xfbc   :  { %v5606_v46 = vpop.xlane.xlu1 %5605 }
 0xfbd   :  { %v5608_v36 = vmul.f32 0.03125, %v5606_v46 }
 0xfbe   :  { %v5603_v30 = vpop.xlane.xlu0 %5602 }
 0xfbf   :  { %v5607_v60 = vmul.f32 0.03125, %v5603_v30  ;;  %v5610_v3 = vsub.f32 %v5600_v23, %v5608_v36 }
 0xfc1   :  { %v5609_v48 = vsub.f32 %v5599_v45, %v5607_v60  ;;  %v5612_v39 = vmul.f32 %v5610_v3, %v5610_v3 }
 0xfc3   :  { %v5611_v8 = vmul.f32 %v5609_v48, %v5609_v48  ;;  %v5616_v51 = vsel %vm93_vm0, %v5612_v39, 0.0 }
 0xfc5   :  { %v5613_v61 = vsel %vm93_vm0, %v5611_v8, 0.0 }
 0xfc6   :  { %5614 = vadd.xlane.f32.xlu0 %v5613_v61 }
 0xfca   :  { %5617 = vadd.xlane.f32.xlu0 %v5616_v51 }
0x104f   :  { %v5615_v55 = vpop.xlane.xlu0 %5614 }
0x1050   :  { %v5619_v49 = vmul.f32 0.03125, %v5615_v55 }
0x1052   :  { %v5621_v4 = vadd.f32 1e-05, %v5619_v49 }
0x1053   :  { %v5618_v37 = vpop.xlane.xlu0 %5617 }
0x1054   :  { %6435 = vrsqrt.f32 %v5621_v4  ;;  %v5620_v58 = vmul.f32 0.03125, %v5618_v37 }
0x1056   :  { %v5622_v5 = vadd.f32 1e-05, %v5620_v58 }
0x1058   :  { %6437 = vrsqrt.f32 %v5622_v5 }
0x1061   :  { %v6436_v6 = vpop.eup %6435 }
0x1062   :  { %v5625_v0 = vmul.f32 %v6436_v6, %v5609_v48 }
0x1064   :  { %v5627_v11 = vmul.f32 %v5625_v0, %v7069_v40 }
0x1065   :  { %v6438_v14 = vpop.eup %6437 }
0x1066   :  { %v5626_v16 = vmul.f32 %v6438_v14, %v5610_v3  ;;  %v5629_v19 = vadd.f32 %v5627_v11, %v7072_v42 }
0x1068   :  { %6320 = vmatprep.mubr.msk.f32.mxu1 %vm93_vm0, %v5629_v19  ;;  %v5628_v10 = vmul.f32 %v5626_v16, %v7069_v40 }
0x106a   :  { %v5630_v21 = vadd.f32 %v5628_v10, %v7072_v42 }
0x106c   :  { %6321 = vmatmul.mubr.msk.f32.vlgmr.msra.gmra.mxu1 %vm93_vm0, %v5630_v21 }
0x112c   :  { %v6322_v2 = vpop.f32.mrf.mxu1 }
0x112d   :  { %v5709_v59 = vadd.f32 %v6322_v2, %v7105_v62 }
0x112e   :  { %v5703_v63 = vpop.f32.mrf.mxu1 }
0x112f   :  { %v5704_v22 = vadd.f32 %v5703_v63, %v7105_v62  ;;  %v5713_v27 = vmax.f32 %v5709_v59, 0.0 }
0x1131   :  { %v5712_v25 = vmax.f32 %v5704_v22, 0.0 }
0x1133   :  { %6339 = vmatprep.mubr.msk.f32.mxu0 %vm2849_vm5, %v5712_v25 }
0x1134   :  { %6340 = vmatmul.mubr.msk.f32.vlgmr.msra.gmra.mxu0 %vm2849_vm5, %v5713_v27 }
0x11f4   :  { %v6341_v26 = vpop.f32.mrf.mxu0 }
0x11f5   :  { %v5792_v28 = vadd.f32 %v6341_v26, %v7115_v13 }
0x11f6   :  { %v5786_v40 = vpop.f32.mrf.mxu0 }
0x11f7   :  { %v5796_v41 = vadd.f32 %v5792_v28, %v5630_v21  ;;  %v5787_v42 = vadd.f32 %v5786_v40, %v7115_v13 }
0x11f9   :  { %v5795_v44 = vadd.f32 %v5787_v42, %v5629_v19  ;;  %v5800_v38 = vsel %vm93_vm0, %v5796_v41, 0.0 }
0x11fa   :  { %5801 = vadd.xlane.f32.xlu0 %v5800_v38 }
0x11fb   :  { %v5797_v20 = vsel %vm93_vm0, %v5795_v44, 0.0 }
0x11fc   :  { %5798 = vadd.xlane.f32.xlu1 %v5797_v20 }
0x1283   :  { %v5802_v62 = vpop.xlane.xlu0 %5801 }
0x1284   :  { %v5804_v12 = vmul.f32 0.03125, %v5802_v62 }
0x1285   :  { %v5799_v32 = vpop.xlane.xlu1 %5798 }
0x1286   :  { %v5806_v29 = vsub.f32 %v5796_v41, %v5804_v12  ;;  %v5803_v9 = vmul.f32 0.03125, %v5799_v32 }
0x1288   :  { %v5805_v17 = vsub.f32 %v5795_v44, %v5803_v9  ;;  %v5808_v35 = vmul.f32 %v5806_v29, %v5806_v29 }
0x128a   :  { %v5812_v15 = vsel %vm93_vm0, %v5808_v35, 0.0  ;;  %v5807_v56 = vmul.f32 %v5805_v17, %v5805_v17 }
0x128b   :  { %5813 = vadd.xlane.f32.xlu0 %v5812_v15 }
0x128c   :  { %v5809_v13 = vsel %vm93_vm0, %v5807_v56, 0.0 }
0x128d   :  { %5810 = vadd.xlane.f32.xlu1 %v5809_v13 }
0x1314   :  { %v5814_v18 = vpop.xlane.xlu0 %5813 }
0x1315   :  { %v5816_v53 = vmul.f32 0.03125, %v5814_v18 }
0x1316   :  { %v5811_v24 = vpop.xlane.xlu1 %5810 }
0x1317   :  { %v5818_v31 = vadd.f32 1e-05, %v5816_v53  ;;  %v5815_v33 = vmul.f32 0.03125, %v5811_v24 }
0x1319   :  { %6439 = vrsqrt.f32 %v5818_v31  ;;  %v5817_v34 = vadd.f32 1e-05, %v5815_v33 }
0x131b   :  { %6441 = vrsqrt.f32 %v5817_v34 }
0x1326   :  { %v6440_v1 = vpop.eup %6439 }
0x1327   :  { %v5822_v54 = vmul.f32 %v6440_v1, %v5806_v29 }
0x1328   :  { %v6442_v7 = vpop.eup %6441 }
0x1329   :  { %v5821_v47 = vmul.f32 %v6442_v7, %v5805_v17  ;;  %v5824_v23 = vmul.f32 %v5822_v54, %v7125_v50 }
0x132b   :  { %v5823_v52 = vmul.f32 %v5821_v47, %v7125_v50  ;;  %v5826_v45 = vadd.f32 %v5824_v23, %v7129_v43 }
0x132d   :  { %v5825_v57 = vadd.f32 %v5823_v52, %v7129_v43  ;;  %5828 = vst.msk [vmem:[#allocation5 + $0x8] sm:$0xff] %vm93_vm0, %v5826_v45 }
0x132f   :  { %5827 = vst.msk [vmem:[#allocation5] sm:$0xff] %vm93_vm0, %v5825_v57 }
0x1330   :  { %6497 = shalt.err (!%p6494_p9)
}
0x1331   :  { %5840 = dma.vmem_to_hbm [thread:$0]  %s5835_s18, 256, %s7611_s6, [#allocation4], %s6511_s24, %s6511_s24, %s6512_s25  }
0x1332   :  { %6508 = dma.done.wait [#allocation4], 256  }
0x1333   :  { %6509 = vsyncadd [#allocation4], 4294967040 }
0x1334   :  { %5844 = vsyncpa [#allocation3], 1 }
0x1335   :  { %5845 = vsyncpa [#allocation4], 1 }

</bundles_post_ra>
